<compile_context>
chip_gen: v7x
topology: tpu7x:2x2x1
jax: 0.10.0
libtpu: 0.0.40
codegen_flags: <defaults>
</compile_context>

<pallas_src>
import functools

import jax
import jax.numpy as jnp
import numpy as np
from jax.experimental import pallas as pl
from jax.experimental.pallas import tpu as pltpu


# ----------------------------------------------------------------------------
# Pallas kernel: one (batch-block, layer) grid point per step.
# ----------------------------------------------------------------------------
def _transformer_kernel(*refs, n_heads, scale, self_attn):
    if self_attn:
        (x_ref, wqkv_ref, bqkv_ref, wf_ref, bf_ref, out_ref, x_carry) = refs
        kv_ref = None
    else:
        (x_ref, kv_ref, wq_ref, bq_ref, wkv_ref, bkv_ref,
         wf_ref, bf_ref, out_ref, x_carry) = refs

    Bblk, Sq, H = x_ref.shape
    hd = H // n_heads
    inv_scale = np.float32(1.0 / scale)

    l = pl.program_id(1)
    n_layers = pl.num_programs(1)

    # Initialize the f32 residual-stream carry at the first layer of each batch block.
    @pl.when(l == 0)
    def _init():
        x_carry[...] = x_ref[...].astype(jnp.float32)

    x = x_carry[...]                                         # (Bblk, Sq, H) f32
    x2 = x.reshape(Bblk * Sq, H).astype(jnp.bfloat16)        # MXU input

    # --- Fused projections: one wide bf16 matmul per source, f32 accumulate. ---
    if self_attn:
        Sk = Sq
        qkv = (jnp.dot(x2, wqkv_ref[0], preferred_element_type=jnp.float32)
               + bqkv_ref[0]).astype(jnp.bfloat16)           # (Bblk*Sq, 3H), single cast
        q = qkv[:, 0 * H:1 * H].reshape(Bblk, Sq, H)
        k = qkv[:, 1 * H:2 * H].reshape(Bblk, Sk, H)
        v = qkv[:, 2 * H:3 * H].reshape(Bblk, Sk, H)
    else:
        Sk = kv_ref.shape[1]
        kv2 = kv_ref[...].reshape(Bblk * Sk, H)              # already bf16
        q = (jnp.dot(x2, wq_ref[0], preferred_element_type=jnp.float32)
             + bq_ref[0]).astype(jnp.bfloat16).reshape(Bblk, Sq, H)
        kvp = (jnp.dot(kv2, wkv_ref[0], preferred_element_type=jnp.float32)
               + bkv_ref[0]).astype(jnp.bfloat16)            # (Bblk*Sk, 2H)
        k = kvp[:, 0:H].reshape(Bblk, Sk, H)
        v = kvp[:, H:2 * H].reshape(Bblk, Sk, H)

    # --- Per-head scaled dot product (NO softmax; scale = sqrt(H)), Bblk-batched. ---
    heads = []
    for hh in range(n_heads):
        sl = slice(hh * hd, (hh + 1) * hd)
        s = jnp.einsum('bqd,bkd->bqk', q[:, :, sl], k[:, :, sl],
                       preferred_element_type=jnp.float32) * inv_scale
        heads.append(jnp.einsum('bqk,bkd->bqd', s.astype(jnp.bfloat16),
                                v[:, :, sl],
                                preferred_element_type=jnp.float32))
    attn = jnp.concatenate(heads, axis=-1)                   # (Bblk, Sq, H) f32

    # --- Residual around attention, then residual around fc (norm=False). ---
    x = attn + x
    fc = jnp.dot(x.reshape(Bblk * Sq, H).astype(jnp.bfloat16), wf_ref[0],
                 preferred_element_type=jnp.float32) + bf_ref[0]
    x = fc.reshape(Bblk, Sq, H) + x
    x_carry[...] = x

    # flat=True: mean over the seq axis -> lane-batched (Bblk, H) store, last layer only.
    @pl.when(l == n_layers - 1)
    def _finalize():
        out_ref[...] = jnp.mean(x, axis=1)


# ----------------------------------------------------------------------------
# Block-size selection
# ----------------------------------------------------------------------------
def _choose_block_b(B, block_b):
    """Pick the per-grid-step batch block size.

    - Small batches: a single block (Bblk == B_pad) so the output block's sublane dim
      equals the full dim (satisfies the (8,128) block rule without extra padding).
    - Larger batches: 8-aligned blocks, at least two of them, so the "parallel" grid
      axis can split across both v7x TensorCores while Bblk*seq stays large enough to
      fill the 256-wide MXU on v6e/v7x.
    """
    if B <= min(16, block_b):
        return B
    bblk = min(block_b, -(-B // 2))
    return max(8, (bblk // 8) * 8)


# ----------------------------------------------------------------------------
# Wrapper
# ----------------------------------------------------------------------------
def transformer_forward(x, params, kv=None, *, n_heads, flat=True, block_b=64):
    """x: (batch1, batch2, seq, h).  kv: optional (batch1, batch2, seq_kv, h)."""
    assert flat, "only the default flat=True path is implemented"
    b1, b2, Sq, H = x.shape
    assert H % n_heads == 0
    B = b1 * b2
    self_attn = kv is None

    wq, bq, wk, bk, wv, bv, wf, bf = params   # W*: (L, H, H) pre-transposed; b*: (L, 1, H)
    L = wq.shape[0]

    # --- batch-block tiling (pad B so the grid covers it; padded rows discarded). ---
    Bblk = _choose_block_b(B, block_b)
    B_pad = -(-B // Bblk) * Bblk

    # bf16 activations: halves HBM->VMEM DMA; residual math is f32 inside the kernel.
    x_flat = x.reshape(B, Sq, H).astype(jnp.bfloat16)
    if B_pad != B:
        x_flat = jnp.pad(x_flat, ((0, B_pad - B), (0, 0), (0, 0)))

    wf_b = wf.astype(jnp.bfloat16)
    bf_b = bf.astype(jnp.float32)

    # Per-layer streamed weight/bias blocks (index_map over the layer grid axis):
    # VMEM holds only one (double-buffered) layer of weights at a time.
    def wspec(n_out):
        return pl.BlockSpec((1, H, n_out), lambda b, l: (l, 0, 0))

    def bspec(n_out):
        return pl.BlockSpec((1, 1, n_out), lambda b, l: (l, 0, 0))

    x_spec = pl.BlockSpec((Bblk, Sq, H), lambda b, l: (b, 0, 0))
    out_spec = pl.BlockSpec((Bblk, H), lambda b, l: (b, 0))

    if self_attn:
        # Fuse Q|K|V weights -> one (H, 3H) matmul per layer.
        w_qkv = jnp.concatenate([wq, wk, wv], axis=-1).astype(jnp.bfloat16)   # (L, H, 3H)
        b_qkv = jnp.concatenate([bq, bk, bv], axis=-1).astype(jnp.float32)    # (L, 1, 3H)
        operands = (x_flat, w_qkv, b_qkv, wf_b, bf_b)
        in_specs = [x_spec, wspec(3 * H), bspec(3 * H), wspec(H), bspec(H)]
        kv_block_bytes = 0
        w_layer_bytes = (H * 3 * H + H * H) * 2
        b_layer_bytes = (3 * H + H) * 4
    else:
        Sk = kv.shape[2]
        kv_flat = kv.reshape(B, Sk, H).astype(jnp.bfloat16)
        if B_pad != B:
            kv_flat = jnp.pad(kv_flat, ((0, B_pad - B), (0, 0), (0, 0)))
        kv_spec = pl.BlockSpec((Bblk, Sk, H), lambda b, l: (b, 0, 0))
        # Q separate; fuse K|V -> one (H, 2H) matmul per layer on the kv source.
        w_q = wq.astype(jnp.bfloat16)
        b_q = bq.astype(jnp.float32)
        w_kv = jnp.concatenate([wk, wv], axis=-1).astype(jnp.bfloat16)        # (L, H, 2H)
        b_kv = jnp.concatenate([bk, bv], axis=-1).astype(jnp.float32)         # (L, 1, 2H)
        operands = (x_flat, kv_flat, w_q, b_q, w_kv, b_kv, wf_b, bf_b)
        in_specs = [x_spec, kv_spec, wspec(H), bspec(H), wspec(2 * H), bspec(2 * H),
                    wspec(H), bspec(H)]
        kv_block_bytes = Bblk * Sk * H * 2
        w_layer_bytes = (H * H + H * 2 * H + H * H) * 2
        b_layer_bytes = (H + 2 * H + H) * 4

    # --- explicit VMEM budget (double-buffered pipeline blocks + carry + temporaries). ---
    x_block_bytes = Bblk * Sq * H * 2
    out_block_bytes = Bblk * H * 4
    carry_bytes = Bblk * Sq * H * 4
    working_bytes = 6 * Bblk * Sq * H * 4          # qkv/q/k/v/scores/fc temporaries (generous)
    est = (2 * (x_block_bytes + kv_block_bytes + w_layer_bytes + b_layer_bytes
                + out_block_bytes) + carry_bytes + working_bytes)
    vmem_limit = int(min(56 * 2**20, max(32 * 2**20, 2 * est)))   # stay inside v7x's 64 MiB

    kernel = functools.partial(
        _transformer_kernel,
        n_heads=n_heads, scale=float(np.sqrt(H)), self_attn=self_attn)

    out = pl.pallas_call(
        kernel,
        out_shape=jax.ShapeDtypeStruct((B_pad, H), jnp.float32),
        grid_spec=pltpu.PrefetchScalarGridSpec(
            num_scalar_prefetch=0,
            grid=(B_pad // Bblk, L),                 # (batch blocks, layers)
            in_specs=in_specs,
            out_specs=out_spec,
            scratch_shapes=[pltpu.VMEM((Bblk, Sq, H), jnp.float32)],   # residual carry
        ),
        compiler_params=pltpu.CompilerParams(
            dimension_semantics=("parallel", "arbitrary"),
            vmem_limit_bytes=vmem_limit),
    )(*operands)

    return out[:B].reshape(b1, b2, H)


# ----------------------------------------------------------------------------
# Parameter init (deterministic, PyTorch-Linear-style uniform +/-1/sqrt(h))
# ----------------------------------------------------------------------------
def init_params(key, h, n_layers):
    bound = 1.0 / np.sqrt(h)
    keys = jax.random.split(key, 8)

    def w(k):  # stored pre-transposed: (L, in=h, out=h) so kernel does x @ W
        return jax.random.uniform(k, (n_layers, h, h), jnp.float32, -bound, bound)

    def b(k):
        return jax.random.uniform(k, (n_layers, 1, h), jnp.float32, -bound, bound)

    return (w(keys[0]), b(keys[1]),   # Q
            w(keys[2]), b(keys[3]),   # K
            w(keys[4]), b(keys[5]),   # V
            w(keys[6]), b(keys[7]))   # fc


# ----------------------------------------------------------------------------
# Pure-JAX reference (mirrors the PyTorch module exactly, f32) for verification
# ----------------------------------------------------------------------------
def reference_forward(x, params, kv=None, *, n_heads, flat=True):
    wq, bq, wk, bk, wv, bv, wf, bf = params
    L, H, _ = wq.shape
    hd = H // n_heads
    scale = np.sqrt(H)

    for l in range(L):
        kv_src = x if kv is None else kv
        q = x @ wq[l] + bq[l]
        k = kv_src @ wk[l] + bk[l]
        v = kv_src @ wv[l] + bv[l]

        def split_heads(t):  # (b1,b2,S,H) -> (b1,b2,nH,S,hd)
            b1, b2, S, _ = t.shape
            return t.reshape(b1, b2, S, n_heads, hd).transpose(0, 1, 3, 2, 4)

        qh, kh, vh = split_heads(q), split_heads(k), split_heads(v)
        s = jnp.einsum('abnqd,abnkd->abnqk', qh, kh) / scale
        o = jnp.einsum('abnqk,abnkd->abnqd', s, vh)
        b1, b2, _, Sq, _ = o.shape
        attn = o.transpose(0, 1, 3, 2, 4).reshape(b1, b2, Sq, H)

        x = attn + x
        x = (x @ wf[l] + bf[l]) + x
    if flat:
        x = x.mean(-2)
    return x


if __name__ == "__main__":
    # Small shapes consistent with the module: x is (batch1, batch2, seq, h).
    batch1, batch2, seq, h = 2, 2, 8, 32
    n_heads = 4

    key = jax.random.PRNGKey(0)
    kx, kkv, kp1, kp2 = jax.random.split(key, 4)
    x = jax.random.normal(kx, (batch1, batch2, seq, h), jnp.float32)

    # Case 1: self-attention, 2 layers.
    params = init_params(kp1, h, n_layers=2)
    out = jax.block_until_ready(
        transformer_forward(x, params, kv=None, n_heads=n_heads, flat=True))
    ref = reference_forward(x, params, kv=None, n_heads=n_heads, flat=True)
    assert out.shape == (batch1, batch2, h), out.shape
    # bf16 MXU inputs / bf16 activation DMA (f32 accumulation) -> loose tolerance.
    np.testing.assert_allclose(np.asarray(out), np.asarray(ref), rtol=5e-2, atol=5e-2)

    # Case 2: cross-attention (kv given, seq_kv=16), 1 layer.
    seq_kv = 16
    kv = jax.random.normal(kkv, (batch1, batch2, seq_kv, h), jnp.float32)
    params2 = init_params(kp2, h, n_layers=1)
    out2 = jax.block_until_ready(
        transformer_forward(x, params2, kv=kv, n_heads=n_heads, flat=True))
    ref2 = reference_forward(x, params2, kv=kv, n_heads=n_heads, flat=True)
    assert out2.shape == (batch1, batch2, h), out2.shape
    np.testing.assert_allclose(np.asarray(out2), np.asarray(ref2), rtol=5e-2, atol=5e-2)

    print("KERNEL_OK")
</pallas_src>

<mosaic_0001>
module attributes {stable_mosaic.version = 11 : i64} {
  func.func @_transformer_kernel(%arg0: i32, %arg1: i32, %arg2: memref<4x8x32xbf16, #tpu.memory_space<vmem>>, %arg3: memref<1x32x96xbf16, #tpu.memory_space<vmem>>, %arg4: memref<1x1x96xf32, #tpu.memory_space<vmem>>, %arg5: memref<1x32x32xbf16, #tpu.memory_space<vmem>>, %arg6: memref<1x1x32xf32, #tpu.memory_space<vmem>>, %arg7: memref<4x32xf32, #tpu.memory_space<vmem>>, %arg8: memref<4x8x32xf32, #tpu.memory_space<vmem>>) attributes {dimension_semantics = [#tpu.dimension_semantics<parallel>, #tpu.dimension_semantics<arbitrary>], iteration_bounds = array<i64: 1, 2>, scalar_prefetch = 0 : i64, scratch_operands = 1 : i64, tpu.core_type = #tpu.core_type<tc>, window_params = [{transform_indices = @transform_0, window_bounds = array<i64: 4, 8, 32>}, {transform_indices = @transform_1, window_bounds = array<i64: 1, 32, 96>}, {transform_indices = @transform_2, window_bounds = array<i64: 1, 1, 96>}, {transform_indices = @transform_3, window_bounds = array<i64: 1, 32, 32>}, {transform_indices = @transform_4, window_bounds = array<i64: 1, 1, 32>}, {transform_indices = @transform_5, window_bounds = array<i64: 4, 32>}]} {
    %c0_i32 = arith.constant 0 : i32
    %0 = arith.cmpi eq, %arg1, %c0_i32 : i32
    %1 = arith.extui %0 : i1 to i32
    %c0_i32_0 = arith.constant 0 : i32
    %2 = arith.cmpi ne, %1, %c0_i32_0 : i32
    scf.if %2 {
      %c0_32 = arith.constant 0 : index
      %c0_33 = arith.constant 0 : index
      %c0_34 = arith.constant 0 : index
      %69 = vector.load %arg2[%c0_32, %c0_33, %c0_34] : memref<4x8x32xbf16, #tpu.memory_space<vmem>>, vector<4x8x32xbf16>
      %70 = arith.extf %69 : vector<4x8x32xbf16> to vector<4x8x32xf32>
      %c0_35 = arith.constant 0 : index
      %c0_36 = arith.constant 0 : index
      %c0_37 = arith.constant 0 : index
      %71 = vector.load %arg8[%c0_35, %c0_36, %c0_37] : memref<4x8x32xf32, #tpu.memory_space<vmem>>, vector<4x8x32xf32>
      tpu.vector_store %arg8[%c0_35, %c0_36, %c0_37], %70 {strides = array<i32>} : memref<4x8x32xf32, #tpu.memory_space<vmem>>, vector<4x8x32xf32>,
    } else {
    }
    %c0 = arith.constant 0 : index
    %c0_1 = arith.constant 0 : index
    %c0_2 = arith.constant 0 : index
    %3 = vector.load %arg8[%c0, %c0_1, %c0_2] : memref<4x8x32xf32, #tpu.memory_space<vmem>>, vector<4x8x32xf32>
    %4 = vector.shape_cast %3 : vector<4x8x32xf32> to vector<32x32xf32>
    %5 = arith.truncf %4 : vector<32x32xf32> to vector<32x32xbf16>
    %c0_3 = arith.constant 0 : index
    %c0_4 = arith.constant 0 : index
    %c0_5 = arith.constant 0 : index
    %6 = vector.load %arg3[%c0_3, %c0_4, %c0_5] : memref<1x32x96xbf16, #tpu.memory_space<vmem>>, vector<1x32x96xbf16>
    %7 = vector.shape_cast %6 : vector<1x32x96xbf16> to vector<32x96xbf16>
    %cst = arith.constant dense<0.000000e+00> : vector<32x96xf32>
    %8 = tpu.matmul %5, %7, %cst {dimension_numbers = #tpu.dot_dimension_numbers<[1], [0], [0], [1], [0, 0, 1, 1], [], []>} : vector<32x32xbf16>, vector<32x96xbf16>, vector<32x96xf32> -> vector<32x96xf32>
    %c0_6 = arith.constant 0 : index
    %c0_7 = arith.constant 0 : index
    %c0_8 = arith.constant 0 : index
    %9 = vector.load %arg4[%c0_6, %c0_7, %c0_8] : memref<1x1x96xf32, #tpu.memory_space<vmem>>, vector<1x1x96xf32>
    %10 = vector.shape_cast %9 : vector<1x1x96xf32> to vector<1x96xf32>
    %11 = vector.broadcast %10 : vector<1x96xf32> to vector<32x96xf32>
    %12 = arith.addf %8, %11 : vector<32x96xf32>
    %13 = arith.truncf %12 : vector<32x96xf32> to vector<32x96xbf16>
    %14 = vector.extract_strided_slice %13 {offsets = [0, 0], sizes = [32, 32], strides = [1, 1]} : vector<32x96xbf16> to vector<32x32xbf16>
    %15 = vector.shape_cast %14 : vector<32x32xbf16> to vector<4x8x32xbf16>
    %16 = vector.extract_strided_slice %13 {offsets = [0, 32], sizes = [32, 32], strides = [1, 1]} : vector<32x96xbf16> to vector<32x32xbf16>
    %17 = vector.shape_cast %16 : vector<32x32xbf16> to vector<4x8x32xbf16>
    %18 = vector.extract_strided_slice %13 {offsets = [0, 64], sizes = [32, 32], strides = [1, 1]} : vector<32x96xbf16> to vector<32x32xbf16>
    %19 = vector.shape_cast %18 : vector<32x32xbf16> to vector<4x8x32xbf16>
    %20 = vector.extract_strided_slice %15 {offsets = [0, 0, 0], sizes = [4, 8, 8], strides = [1, 1, 1]} : vector<4x8x32xbf16> to vector<4x8x8xbf16>
    %21 = vector.extract_strided_slice %17 {offsets = [0, 0, 0], sizes = [4, 8, 8], strides = [1, 1, 1]} : vector<4x8x32xbf16> to vector<4x8x8xbf16>
    "tpu.trace_start"() <{level = 10 : i32, message = "bqd,bkd->bqk"}> : () -> ()
    %cst_9 = arith.constant dense<0.000000e+00> : vector<4x8x8xf32>
    %22 = tpu.matmul %20, %21, %cst_9 {dimension_numbers = #tpu.dot_dimension_numbers<[2], [2], [1], [1], [0, 0, 0, 1, 1, 1], [0], [0]>} : vector<4x8x8xbf16>, vector<4x8x8xbf16>, vector<4x8x8xf32> -> vector<4x8x8xf32>
    "tpu.trace_stop"() : () -> ()
    %cst_10 = arith.constant 0.176776692 : f32
    %23 = vector.broadcast %cst_10 : f32 to vector<4x8x8xf32>
    %24 = arith.mulf %22, %23 : vector<4x8x8xf32>
    %25 = arith.truncf %24 : vector<4x8x8xf32> to vector<4x8x8xbf16>
    %26 = vector.extract_strided_slice %19 {offsets = [0, 0, 0], sizes = [4, 8, 8], strides = [1, 1, 1]} : vector<4x8x32xbf16> to vector<4x8x8xbf16>
    "tpu.trace_start"() <{level = 10 : i32, message = "bqk,bkd->bqd"}> : () -> ()
    %cst_11 = arith.constant dense<0.000000e+00> : vector<4x8x8xf32>
    %27 = tpu.matmul %25, %26, %cst_11 {dimension_numbers = #tpu.dot_dimension_numbers<[2], [1], [1], [2], [0, 0, 0, 1, 1, 2], [0], [0]>} : vector<4x8x8xbf16>, vector<4x8x8xbf16>, vector<4x8x8xf32> -> vector<4x8x8xf32>
    "tpu.trace_stop"() : () -> ()
    %28 = vector.extract_strided_slice %15 {offsets = [0, 0, 8], sizes = [4, 8, 8], strides = [1, 1, 1]} : vector<4x8x32xbf16> to vector<4x8x8xbf16>
    %29 = vector.extract_strided_slice %17 {offsets = [0, 0, 8], sizes = [4, 8, 8], strides = [1, 1, 1]} : vector<4x8x32xbf16> to vector<4x8x8xbf16>
    "tpu.trace_start"() <{level = 10 : i32, message = "bqd,bkd->bqk"}> : () -> ()
    %cst_12 = arith.constant dense<0.000000e+00> : vector<4x8x8xf32>
    %30 = tpu.matmul %28, %29, %cst_12 {dimension_numbers = #tpu.dot_dimension_numbers<[2], [2], [1], [1], [0, 0, 0, 1, 1, 1], [0], [0]>} : vector<4x8x8xbf16>, vector<4x8x8xbf16>, vector<4x8x8xf32> -> vector<4x8x8xf32>
    "tpu.trace_stop"() : () -> ()
    %cst_13 = arith.constant 0.176776692 : f32
    %31 = vector.broadcast %cst_13 : f32 to vector<4x8x8xf32>
    %32 = arith.mulf %30, %31 : vector<4x8x8xf32>
    %33 = arith.truncf %32 : vector<4x8x8xf32> to vector<4x8x8xbf16>
    %34 = vector.extract_strided_slice %19 {offsets = [0, 0, 8], sizes = [4, 8, 8], strides = [1, 1, 1]} : vector<4x8x32xbf16> to vector<4x8x8xbf16>
    "tpu.trace_start"() <{level = 10 : i32, message = "bqk,bkd->bqd"}> : () -> ()
    %cst_14 = arith.constant dense<0.000000e+00> : vector<4x8x8xf32>
    %35 = tpu.matmul %33, %34, %cst_14 {dimension_numbers = #tpu.dot_dimension_numbers<[2], [1], [1], [2], [0, 0, 0, 1, 1, 2], [0], [0]>} : vector<4x8x8xbf16>, vector<4x8x8xbf16>, vector<4x8x8xf32> -> vector<4x8x8xf32>
    "tpu.trace_stop"() : () -> ()
    %36 = vector.extract_strided_slice %15 {offsets = [0, 0, 16], sizes = [4, 8, 8], strides = [1, 1, 1]} : vector<4x8x32xbf16> to vector<4x8x8xbf16>
    %37 = vector.extract_strided_slice %17 {offsets = [0, 0, 16], sizes = [4, 8, 8], strides = [1, 1, 1]} : vector<4x8x32xbf16> to vector<4x8x8xbf16>
    "tpu.trace_start"() <{level = 10 : i32, message = "bqd,bkd->bqk"}> : () -> ()
    %cst_15 = arith.constant dense<0.000000e+00> : vector<4x8x8xf32>
    %38 = tpu.matmul %36, %37, %cst_15 {dimension_numbers = #tpu.dot_dimension_numbers<[2], [2], [1], [1], [0, 0, 0, 1, 1, 1], [0], [0]>} : vector<4x8x8xbf16>, vector<4x8x8xbf16>, vector<4x8x8xf32> -> vector<4x8x8xf32>
    "tpu.trace_stop"() : () -> ()
    %cst_16 = arith.constant 0.176776692 : f32
    %39 = vector.broadcast %cst_16 : f32 to vector<4x8x8xf32>
    %40 = arith.mulf %38, %39 : vector<4x8x8xf32>
    %41 = arith.truncf %40 : vector<4x8x8xf32> to vector<4x8x8xbf16>
    %42 = vector.extract_strided_slice %19 {offsets = [0, 0, 16], sizes = [4, 8, 8], strides = [1, 1, 1]} : vector<4x8x32xbf16> to vector<4x8x8xbf16>
    "tpu.trace_start"() <{level = 10 : i32, message = "bqk,bkd->bqd"}> : () -> ()
    %cst_17 = arith.constant dense<0.000000e+00> : vector<4x8x8xf32>
    %43 = tpu.matmul %41, %42, %cst_17 {dimension_numbers = #tpu.dot_dimension_numbers<[2], [1], [1], [2], [0, 0, 0, 1, 1, 2], [0], [0]>} : vector<4x8x8xbf16>, vector<4x8x8xbf16>, vector<4x8x8xf32> -> vector<4x8x8xf32>
    "tpu.trace_stop"() : () -> ()
    %44 = vector.extract_strided_slice %15 {offsets = [0, 0, 24], sizes = [4, 8, 8], strides = [1, 1, 1]} : vector<4x8x32xbf16> to vector<4x8x8xbf16>
    %45 = vector.extract_strided_slice %17 {offsets = [0, 0, 24], sizes = [4, 8, 8], strides = [1, 1, 1]} : vector<4x8x32xbf16> to vector<4x8x8xbf16>
    "tpu.trace_start"() <{level = 10 : i32, message = "bqd,bkd->bqk"}> : () -> ()
    %cst_18 = arith.constant dense<0.000000e+00> : vector<4x8x8xf32>
    %46 = tpu.matmul %44, %45, %cst_18 {dimension_numbers = #tpu.dot_dimension_numbers<[2], [2], [1], [1], [0, 0, 0, 1, 1, 1], [0], [0]>} : vector<4x8x8xbf16>, vector<4x8x8xbf16>, vector<4x8x8xf32> -> vector<4x8x8xf32>
    "tpu.trace_stop"() : () -> ()
    %cst_19 = arith.constant 0.176776692 : f32
    %47 = vector.broadcast %cst_19 : f32 to vector<4x8x8xf32>
    %48 = arith.mulf %46, %47 : vector<4x8x8xf32>
    %49 = arith.truncf %48 : vector<4x8x8xf32> to vector<4x8x8xbf16>
    %50 = vector.extract_strided_slice %19 {offsets = [0, 0, 24], sizes = [4, 8, 8], strides = [1, 1, 1]} : vector<4x8x32xbf16> to vector<4x8x8xbf16>
    "tpu.trace_start"() <{level = 10 : i32, message = "bqk,bkd->bqd"}> : () -> ()
    %cst_20 = arith.constant dense<0.000000e+00> : vector<4x8x8xf32>
    %51 = tpu.matmul %49, %50, %cst_20 {dimension_numbers = #tpu.dot_dimension_numbers<[2], [1], [1], [2], [0, 0, 0, 1, 1, 2], [0], [0]>} : vector<4x8x8xbf16>, vector<4x8x8xbf16>, vector<4x8x8xf32> -> vector<4x8x8xf32>
    "tpu.trace_stop"() : () -> ()
    %52 = tpu.concatenate %27, %35, %43, %51 in 2 : vector<4x8x8xf32>, vector<4x8x8xf32>, vector<4x8x8xf32>, vector<4x8x8xf32> -> vector<4x8x32xf32>
    %53 = arith.addf %52, %3 : vector<4x8x32xf32>
    %54 = vector.shape_cast %53 : vector<4x8x32xf32> to vector<32x32xf32>
    %55 = arith.truncf %54 : vector<32x32xf32> to vector<32x32xbf16>
    %c0_21 = arith.constant 0 : index
    %c0_22 = arith.constant 0 : index
    %c0_23 = arith.constant 0 : index
    %56 = vector.load %arg5[%c0_21, %c0_22, %c0_23] : memref<1x32x32xbf16, #tpu.memory_space<vmem>>, vector<1x32x32xbf16>
    %57 = vector.shape_cast %56 : vector<1x32x32xbf16> to vector<32x32xbf16>
    %cst_24 = arith.constant dense<0.000000e+00> : vector<32x32xf32>
    %58 = tpu.matmul %55, %57, %cst_24 {dimension_numbers = #tpu.dot_dimension_numbers<[1], [0], [0], [1], [0, 0, 1, 1], [], []>} : vector<32x32xbf16>, vector<32x32xbf16>, vector<32x32xf32> -> vector<32x32xf32>
    %c0_25 = arith.constant 0 : index
    %c0_26 = arith.constant 0 : index
    %c0_27 = arith.constant 0 : index
    %59 = vector.load %arg6[%c0_25, %c0_26, %c0_27] : memref<1x1x32xf32, #tpu.memory_space<vmem>>, vector<1x1x32xf32>
    %60 = vector.shape_cast %59 : vector<1x1x32xf32> to vector<1x32xf32>
    %61 = vector.broadcast %60 : vector<1x32xf32> to vector<32x32xf32>
    %62 = arith.addf %58, %61 : vector<32x32xf32>
    %63 = vector.shape_cast %62 : vector<32x32xf32> to vector<4x8x32xf32>
    %64 = arith.addf %63, %53 : vector<4x8x32xf32>
    %c0_28 = arith.constant 0 : index
    %c0_29 = arith.constant 0 : index
    %c0_30 = arith.constant 0 : index
    %65 = vector.load %arg8[%c0_28, %c0_29, %c0_30] : memref<4x8x32xf32, #tpu.memory_space<vmem>>, vector<4x8x32xf32>
    tpu.vector_store %arg8[%c0_28, %c0_29, %c0_30], %64 {strides = array<i32>} : memref<4x8x32xf32, #tpu.memory_space<vmem>>, vector<4x8x32xf32>,
    %c1_i32 = arith.constant 1 : i32
    %66 = arith.cmpi eq, %arg1, %c1_i32 : i32
    %67 = arith.extui %66 : i1 to i32
    %c0_i32_31 = arith.constant 0 : i32
    %68 = arith.cmpi ne, %67, %c0_i32_31 : i32
    scf.if %68 {
      %cst_32 = arith.constant dense<0.000000e+00> : vector<4x32xf32>
      %69 = vector.multi_reduction <add>, %64, %cst_32 [1] : vector<4x8x32xf32> to vector<4x32xf32>
      %cst_33 = arith.constant 8.000000e+00 : f32
      %70 = vector.broadcast %cst_33 : f32 to vector<4x32xf32>
      %71 = arith.divf %69, %70 : vector<4x32xf32>
      %c0_34 = arith.constant 0 : index
      %c0_35 = arith.constant 0 : index
      %72 = vector.load %arg7[%c0_34, %c0_35] : memref<4x32xf32, #tpu.memory_space<vmem>>, vector<4x32xf32>
      tpu.vector_store %arg7[%c0_34, %c0_35], %71 {strides = array<i32>} : memref<4x32xf32, #tpu.memory_space<vmem>>, vector<4x32xf32>,
    } else {
    }
    return
  }
  func.func @transform_0(%arg0: i32, %arg1: i32) -> (i32, i32, i32) {
    %c0_i32 = arith.constant 0 : i32
    %c0_i32_0 = arith.constant 0 : i32
    %c0_i32_1 = arith.constant 0 : i32
    return %arg0, %c0_i32, %c0_i32_0 : i32, i32, i32
  }
  func.func @transform_1(%arg0: i32, %arg1: i32) -> (i32, i32, i32) {
    %c0_i32 = arith.constant 0 : i32
    %c0_i32_0 = arith.constant 0 : i32
    %c0_i32_1 = arith.constant 0 : i32
    return %arg1, %c0_i32, %c0_i32_0 : i32, i32, i32
  }
  func.func @transform_2(%arg0: i32, %arg1: i32) -> (i32, i32, i32) {
    %c0_i32 = arith.constant 0 : i32
    %c0_i32_0 = arith.constant 0 : i32
    %c0_i32_1 = arith.constant 0 : i32
    return %arg1, %c0_i32, %c0_i32_0 : i32, i32, i32
  }
  func.func @transform_3(%arg0: i32, %arg1: i32) -> (i32, i32, i32) {
    %c0_i32 = arith.constant 0 : i32
    %c0_i32_0 = arith.constant 0 : i32
    %c0_i32_1 = arith.constant 0 : i32
    return %arg1, %c0_i32, %c0_i32_0 : i32, i32, i32
  }
  func.func @transform_4(%arg0: i32, %arg1: i32) -> (i32, i32, i32) {
    %c0_i32 = arith.constant 0 : i32
    %c0_i32_0 = arith.constant 0 : i32
    %c0_i32_1 = arith.constant 0 : i32
    return %arg1, %c0_i32, %c0_i32_0 : i32, i32, i32
  }
  func.func @transform_5(%arg0: i32, %arg1: i32) -> (i32, i32) {
    %c0_i32 = arith.constant 0 : i32
    %c0_i32_0 = arith.constant 0 : i32
    return %arg0, %c0_i32 : i32, i32
  }
}

</mosaic_0001>

<bundles_post_ra>
// kernel: tpu_custom_call.1
= control target key start
LH: loop header
LB: loop body
LE: loop exit
PB: predicated region body
PF: predicated region fallthrough
CT: control target
= control target key end

     0   :  { %10 = vsyncpa [#allocation4], 0  ;;  %s3594_s0 = inlined_call_operand.hbm [shape: bf16[4,8,32], index: 0, kind: input, shape index: {}]   ;;  %s3595_s1 = inlined_call_operand.hbm [shape: bf16[2,32,96], index: 1, kind: input, shape index: {}]   ;;  %s3596_s2 = inlined_call_operand.vmem [shape: f32[2,1,96], index: 2, kind: input, shape index: {}]   ;;  %s3597_s3 = inlined_call_operand.hbm [shape: bf16[2,32,32], index: 3, kind: input, shape index: {}]   ;;  %s3598_s4 = inlined_call_operand.vmem [shape: f32[2,1,32], index: 4, kind: input, shape index: {}]   ;;  %s3599_s5 = inlined_call_operand.hbm [shape: f32[4,32], index: 5, kind: output, shape index: {}]  }
   0x1   :  { %11 = vsyncpa [#allocation7], 0 }
   0x2   :  { %13 = vsyncpa [#allocation7 + $0x1], 0 }
   0x3   :  { %14 = vsyncpa [#allocation5], 0  ;;  %s3059_s18 = smov 0   ;;  %s3061_s19 = smov 0  }
   0x4   :  { %s3063_s20 = smov 0   ;;  %s3065_s21 = smov 0  }
   0x5   :  { %s3067_s22 = smov 0   ;;  %s3069_s23 = smov 0  }
   0x6 LB: > { %s29_s24 = sadd.s32 1, %s3001_s22  ;;  %s65_s25 = sadd.s32 1, %s2993_s20  ;;  %s3005_s23 = sphi %s3069_s23, %s20_s23   ;;  %s3001_s22 = sphi %s3067_s22, %s3618_s22   ;;  %s2997_s21 = sphi %s3065_s21, %s3617_s21   ;;  %s2993_s20 = sphi %s3063_s20, %s3616_s20   ;;  %s2989_s19 = sphi %s3061_s19, %s3615_s19   ;;  %s2985_s18 = sphi %s3059_s18, %s3614_s18  }
   0x7   : > { %p30_p0 = scmp.ge.s32.totalorder %s29_s24, 2  ;;  %p72_p1 = scmp.ne.s32.totalorder %s2993_s20, %s2989_s19 }
   0x8   : > { %p73_p2 = scmp.eq.s32.totalorder %s3005_s23, 0  ;;  %p2757_p5 = scmp.lt.s32.totalorder %s3005_s23, 2 }
   0x9   : > { %s3620_s24 = smov (%p30_p0, %s29_s24), 0  ;;  %s222_s28 = sand.u32 1, %s3005_s23  }
   0xa   : > { %p3096_p3 = por %p73_p2, %p72_p1  ;;  %s62_s27 = ssub.s32 %s3001_s22, %s3620_s24 }
   0xb   : > { %p63_p4 = scmp.eq.s32.totalorder %s62_s27, 0  ;;  %s224_s29 = sand.u32 1, %s2993_s20  }
   0xc   : > { %s2376_s6 = sshll.u32 %s224_s29, 4  ;;  %s2438_s7 = sshll.u32 %s3001_s22, 8 }
   0xd   : > { %s3106_s30 = scalar_select %p63_p4, %s2993_s20, %s65_s25  }
   0xe   : > { %s3112_s10 = scalar_lea.hbm %s3595_s1, %s2438_s7  ;;  %s226_s11 = scalar_lea.vmem [#allocation6], %s2376_s6 }
   0xf   : > { %s233_s12 = sshll.u32 %s226_s11, 4  ;;  %p3118_p6 = pnand %p2757_p5, %p3096_p3  ;;  %s3114_s12 = int_to_ptr.vmem [resolvable:$true] %s233_s12 }
  0x10   : > { %s3125_s16 = scalar_lea.hbm %s3597_s3, %s2438_s7  ;;  %s253_s17 = scalar_lea.vmem [#allocation8], %s2376_s6 }
  0x11   : > { %s3127_s25 = sshll.u32 %s253_s17, 4  ;;  %s3129_s27 = scalar_lea.sflag [#allocation7], %s222_s28  ;;  %s3161_s25 = int_to_ptr.vmem [resolvable:$true] %s3127_s25 }
  0x12   : > { %s2833_s29 = scalar_lea.hbm %s3112_s10, 256  ;;  %p2835_p8 = pneg %p3118_p6 }
  0x13   : > { %p2834_p7 = scmp.ne.s32.totalorder %s3112_s10, %s2833_s29  ;;  %s2838_s9 = scalar_lea.hbm %s3595_s1, 512 }
  0x14   : > { %p2839_p11 = scmp.lt.u32.totalorder %s3112_s10, %s3595_s1  ;;  %p2840_p12 = scmp.lt.u32.totalorder %s2838_s9, %s2833_s29 }
  0x15   : > { %p2836_p9 = pnand %p2835_p8, %p2834_p7  ;;  %p2842_p0 = scmp.lt.u32.totalorder %s2833_s29, %s3112_s10 }
  0x16   : > { %p2841_p13 = por %p2840_p12, %p2839_p11 }
  0x17   : > { %p2837_p10 = pneg %p2836_p9 }
  0x18   : > { %p2843_p1 = por %p2842_p0, %p2841_p13 }
  0x1a   : > { %p2844_p2 = pnand %p2843_p1, %p2837_p10 }
  0x1c   : > { %2847 = shalt.err (!%p2844_p2)
}
  0x1d   : > { %s2848_s28 = scalar_lea.vmem %s3114_s12, 256  ;;  %s3007_s6 = smov [#allocation6]  }
  0x1e   : > { %p2849_p3 = scmp.ne.s32.totalorder %s3114_s12, %s2848_s28  ;;  %s2853_s14 = sshll.u32 %s3007_s6, 4  ;;  %s2854_s14 = int_to_ptr.vmem [resolvable:$false] %s2853_s14 }
  0x1f   : > { %s2855_s15 = scalar_lea.vmem %s2854_s14, 512  ;;  %p2856_p7 = scmp.lt.s32.totalorder %s3114_s12, %s2854_s14 }
  0x20   : > { %p2851_p4 = pnand %p2849_p3, %p2835_p8  ;;  %p2857_p9 = scmp.lt.s32.totalorder %s2855_s15, %s2848_s28 }
  0x22   : > { %p2852_p5 = pneg %p2851_p4  ;;  %p2858_p11 = por %p2857_p9, %p2856_p7 }
  0x24   : > { %p2859_p12 = pnand %p2858_p11, %p2852_p5 }
  0x26   : > { %2862 = shalt.err (!%p2859_p12)
}
  0x27   : > { %s3008_s17 = smov 64   ;;  %s3009_s29 = smov 4  }
  0x28   : > { %2752 = dma.hbm_to_vmem [thread:$0]  (!%p3118_p6), %s3112_s10, 256, %s3114_s12, %s3129_s27, %s3008_s17, %s3008_s17, %s3009_s29  }
  0x29   : > { %s3164_s26 = sadd.s32 4294967295, %s3005_s23   ;;  %p78_p10 = scmp.ne.s32.totalorder %s2989_s19, %s2985_s18 }
  0x2a   : > { %p3600_p13 = scmp.eq.s32.totalorder %s3164_s26, 0  ;;  %p2373_p0 = scmp.ge.s32.totalorder %s3005_s23, 1 }
  0x2b   : > { %p193_p1 = scmp.lt.s32.totalorder %s3005_s23, 3  ;;  %s3010_s10 = smov [#allocation3]  }
  0x2c   : > { %p3173_p2 = por %p3600_p13, %p78_p10  ;;  %s3181_s12 = sshll.u32 %s3010_s10, 4  ;;  %s209_s12 = int_to_ptr.vmem [resolvable:$true] %s3181_s12 }
  0x2d   : > { %p3177_p3 = pnand %p2373_p0, %p193_p1  ;;  %s2863_s18 = scalar_lea.hbm %s3125_s16, 256 }
  0x2e   : > { %s3605_s8 = scalar_select %p3173_p2, 1, 0 }
  0x2f   : > { %s3606_s9 = scalar_select %p3177_p3, 1, 0 }
  0x30   : > { %p2864_p5 = scmp.ne.s32.totalorder %s3125_s16, %s2863_s18  ;;  %s2868_s28 = scalar_lea.hbm %s3597_s3, 512 }
  0x31   : > { %p2869_p11 = scmp.lt.u32.totalorder %s3125_s16, %s3597_s3  ;;  %p2870_p12 = scmp.lt.u32.totalorder %s2868_s28, %s2863_s18 }
  0x32   : > { %p2866_p7 = pnand %p2864_p5, %p2835_p8  ;;  %p2872_p0 = scmp.lt.u32.totalorder %s2863_s18, %s3125_s16 }
  0x33   : > { %p2871_p10 = por %p2870_p12, %p2869_p11 }
  0x34   : > { %p2867_p9 = pneg %p2866_p7 }
  0x35   : > { %p2873_p1 = por %p2872_p0, %p2871_p10 }
  0x37   : > { %p2874_p13 = pnand %p2873_p1, %p2867_p9 }
  0x39   : > { %2877 = shalt.err (!%p2874_p13)
}
  0x3a   : > { %s2878_s15 = scalar_lea.vmem %s3161_s25, 256  ;;  %s3011_s10 = smov [#allocation8]  }
  0x3b   : > { %p2879_p5 = scmp.ne.s32.totalorder %s3161_s25, %s2878_s15  ;;  %s2883_s11 = sshll.u32 %s3011_s10, 4  ;;  %s2884_s11 = int_to_ptr.vmem [resolvable:$false] %s2883_s11 }
  0x3c   : > { %s2885_s7 = scalar_lea.vmem %s2884_s11, 512  ;;  %p2886_p2 = scmp.lt.s32.totalorder %s3161_s25, %s2884_s11 }
  0x3d   : > { %p2881_p7 = pnand %p2879_p5, %p2835_p8  ;;  %p2887_p11 = scmp.lt.s32.totalorder %s2885_s7, %s2878_s15 }
  0x3f   : > { %p2882_p4 = pneg %p2881_p7  ;;  %p2888_p12 = por %p2887_p11, %p2886_p2 }
  0x41   : > { %p2889_p10 = pnand %p2888_p12, %p2882_p4 }
  0x43   : > { %2892 = shalt.err (!%p2889_p10)
}
  0x44   : > { %2755 = dma.hbm_to_vmem [thread:$0]  (!%p3118_p6), %s3125_s16, 256, %s3161_s25, %s3129_s27, %s3008_s17, %s3008_s17, %s3009_s29  }
  0x45   : > { %p3607_p8 = scmp.eq.s32.totalorder %s3164_s26, 0  ;;  %p3608_p13 = pneg %p3177_p3 }
  0x46   : > { %s2893_s6 = scalar_lea.hbm %s3594_s0, 256 }
  0x47   : > { %p3218_p9 = pnand %p3608_p13, %p3607_p8  ;;  %p2894_p2 = scmp.ne.s32.totalorder %s3594_s0, %s2893_s6 }
  0x48   : > { %p2900_p1 = scmp.lt.u32.totalorder %s2893_s6, %s3594_s0 }
  0x49   : > { %p2895_p4 = pneg %p3218_p9 }
  0x4b   : > { %p2896_p6 = pnand %p2895_p4, %p2894_p2 }
  0x4d   : > { %p2897_p0 = pneg %p2896_p6 }
  0x4f   : > { %p2902_p5 = pnand %p2900_p1, %p2897_p0 }
  0x51   : > { %2905 = shalt.err (!%p2902_p5)
}
  0x52   : > { %s2906_s27 = scalar_lea.vmem %s209_s12, 256  ;;  %p2914_p10 = scmp.lt.s32.totalorder %s209_s12, %s209_s12 }
  0x53   : > { %p2907_p7 = scmp.ne.s32.totalorder %s209_s12, %s2906_s27  ;;  %p2915_p8 = scmp.lt.s32.totalorder %s2906_s27, %s2906_s27 }
  0x55   : > { %p2909_p11 = pnand %p2907_p7, %p2895_p4  ;;  %p2916_p13 = por %p2915_p8, %p2914_p10 }
  0x57   : > { %p2910_p12 = pneg %p2909_p11 }
  0x59   : > { %p2917_p3 = pnand %p2916_p13, %p2910_p12 }
  0x5b   : > { %2920 = shalt.err (!%p2917_p3)
}
  0x5c   : > { %2748 = dma.hbm_to_vmem [thread:$0]  (!%p3218_p9), %s3594_s0, 256, %s209_s12, [#allocation4], %s3008_s17, %s3008_s17, %s3009_s29  }
  0x5d   : > { %p3610_p2 = scmp.ne.s32.totalorder %s3606_s9, 0 }
  0x5e   : > { %p3611_p4 = scmp.eq.s32.totalorder (!%p3610_p2), %s3164_s26, 0 }
  0x5f   : > { %278 = sbr.rel (%p3610_p2) target bundleno = 1989 (0x7c5), region = 40 }
  0x66   : > { %2972 = dma.done.wait (%p3611_p4), [#allocation4], 256   ;;  %p3612_p6 = pmov %p3611_p4 }
  0x67   : > { %s284_s7 = sand.u32 1, %s3164_s26   ;;  %s286_s18 = sand.u32 1, %s2989_s19  }
  0x68   : > { %2974 = vsyncadd (%p3612_p6), [#allocation4], 4294967040  ;;  %s3249_s28 = sshll.u32 %s286_s18, 4  ;;  %s285_s13 = scalar_lea.sflag [#allocation7], %s284_s7 }
  0x69   : > { %s288_s6 = scalar_lea.vmem [#allocation6], %s3249_s28  ;;  %p3613_p3 = scmp.ne.s32.totalorder %s3605_s8, 0 }
  0x6b   : > { %2976 = dma.done.wait (%p3613_p3), %s285_s13, 512  }
  0x6c   : > { %2978 = vsyncadd (%p3613_p3), %s285_s13, 4294966784  ;;  %p331_p9 = scmp.lt.s32.totalorder %s2997_s21, 1  ;;  %s297_s25 = scalar_lea.vmem [#allocation8], %s3249_s28 }
  0x6d   : > { %p2386_p0 = scmp.ne.s32.totalorder %s2997_s21, 0 }
  0x6e   : > { %s3258_s17 = scalar_select %p331_p9, %s2997_s21, 1 }
  0x6f   : > { %341 = sbr.rel (%p2386_p0) target bundleno = 118 (0x76), region = 56  ;;  %v2445_v0 = vld [vmem:[#allocation3] sm:$0xff] (!%p2386_p0)   ;;  %vm350_vm0 = vcmask (!%p2386_p0), 261120   ;;  %v2452_v1 = vld [vmem:[#allocation3 + $0x8] sm:$0xff] (!%p2386_p0)  }
  0x70   : > { %s333_s12 = scalar_lea.vmem %s3596_s2, %s3258_s17  ;;  %s336_s16 = scalar_lea.vmem %s3598_s4, %s3258_s17  ;;  %v2446_v2 = vunpack.c.l.bf16 (!%p2386_p0), %v2445_v0  ;;  %v2447_v3 = vunpack.c.h.bf16 (!%p2386_p0), %v2445_v0  ;;  %v2450_v4 = vunpack.c.l.bf16 (!%p2386_p0), %v2452_v1  ;;  %v2451_v5 = vunpack.c.h.bf16 (!%p2386_p0), %v2452_v1 }
  0x72   : > { %351 = vst.msk [vmem:[#allocation2] sm:$0xff] (!%p2386_p0), %vm350_vm0, %v2446_v2  ;;  %352 = vst.msk [vmem:[#allocation2 + $0x8] sm:$0xff] (!%p2386_p0), %vm350_vm0, %v2447_v3 }
  0x73   : > { %353 = vst.msk [vmem:[#allocation2 + $0x10] sm:$0xff] (!%p2386_p0), %vm350_vm0, %v2450_v4  ;;  %354 = vst.msk [vmem:[#allocation2 + $0x18] sm:$0xff] (!%p2386_p0), %vm350_vm0, %v2451_v5 }
  0x76 PF: > { %v2829_v6 = vld [vmem:[%s288_s6] sm:$0xff]   ;;  %v2830_v7 = vld [vmem:[%s288_s6 + $0x8] sm:$0xff]   ;;  %vm384_vm1 = vcmask 261120   ;;  %v3012_v14 = vmov 0.0   ;;  %vm3013_vm2 = vmmov 0   ;;  %s3014_s10 = smov 96  }
  0x77   : > { %2525 = vmatprep.subr.bf16.mxu0 %v2829_v6  ;;  %2533 = vmatprep.subr.bf16.mxu1 %v3012_v14  ;;  %v2387_v15 = vld [vmem:[%s333_s12] ss:$0 sm:$0xff]  ;;  %s3015_s11 = smov 64   ;;  %s3016_s7 = smov 88   ;;  %vm454_vm3 = vcmask 64512   ;;  %vm658_vm4 = vcmask 1043456  }
  0x78   : > { %2526 = vmatpush3.bf16.msra.mxu0 %v2829_v6  ;;  %2535 = vmatprep.mubr.msk.bf16.mxu1 %vm3013_vm2, %v3012_v14  ;;  %s3017_s18 = smov 120   ;;  %s3018_s13 = smov 56   ;;  %vm2098_vm5 = vcmask 130048   ;;  %vm2103_vm6 = vcmask 195584  }
  0x79   : > { %v3270_v8 = vld [vmem:[#allocation2] sm:$0xff]  ;;  %v3272_v9 = vld [vmem:[#allocation2 + $0x8] sm:$0xff]  ;;  %2527 = vmatprep.subr.bf16.mxu0 %v2830_v7  ;;  %s3019_s6 = smov 80   ;;  %s3020_s29 = smov 112  }
  0x7a   : > { %v3274_v10 = vld [vmem:[#allocation2 + $0x10] sm:$0xff]  ;;  %v359_v11 = vpack.c.bf16 %v3272_v9, %v3270_v8  ;;  %v3278_v12 = vld [vmem:[#allocation2 + $0x18] sm:$0xff]  ;;  %s3021_s9 = smov 48   ;;  %s3022_s12 = smov 72  }
  0x7b   : > { %v360_v13 = vpack.c.bf16 %v3278_v12, %v3274_v10  ;;  %s3023_s14 = smov 104   ;;  %s3024_s15 = smov 40  }
  0x7c   : > { %2529 = vmatprep.mubr.msk.bf16.mxu0 %vm384_vm1, %v359_v11  ;;  %2528 = vmatpush3.bf16.msra.mxu0 %v2830_v7  ;;  %s3025_s8 = smov 8   ;;  %s3026_s27 = smov 16  }
  0x7d   : > { %2539 = vmatprep.subr.bf16.mxu0 %v3012_v14  ;;  %p2433_p1 = scmp.ne.s32.totalorder %s2997_s21, 1 }
  0x7e   : > { %vm2241_vm7 = vcmask (!%p2433_p1), 1041409   ;;  %vm2243_vm8 = vcmask (!%p2433_p1), 1042434   ;;  %vm2245_vm9 = vcmask (!%p2433_p1), 1043459   ;;  %vm2248_vm10 = vcmask (!%p2433_p1), 257024  }
  0x7f   : > { %2530 = vmatmul.mubr.msk.bf16.vlgmr.msra.gmra.mrb[0].mxu0 %vm384_vm1, %v360_v13 }
  0x80   : > { %2541 = vmatprep.mubr.msk.bf16.mxu0 %vm3013_vm2, %v3012_v14 }
 0x152   : > { %v2531_v16 = vpop.f32.mrb[0].mxu0 }
 0x153   : > { %v434_v17 = vadd.f32 %v2531_v16, %v2387_v15  ;;  %v425_v18 = vpop.f32.mrb[1].mxu0 }
 0x154   : > { %v426_v19 = vadd.f32 %v2387_v15, %v425_v18  ;;  %v2532_v20 = vpop.f32.mrb[2].mxu0 }
 0x155   : > { %v3295_v21 = vpack.c.bf16 %v434_v17, %v434_v17  ;;  %v437_v22 = vadd.f32 %v2532_v20, %v2387_v15  ;;  %v428_v23 = vpop.f32.mrb[3].mxu0 }
 0x156   : > { %v3297_v24 = vpack.c.bf16 %v426_v19, %v426_v19  ;;  %v429_v25 = vadd.f32 %v2387_v15, %v428_v23 }
 0x157   : > { %549 = vrot.lane.b32.xlu1 %v3295_v21, %s3014_s10  ;;  %v3301_v26 = vpack.c.bf16 %v437_v22, %v437_v22 }
 0x158   : > { %452 = vrot.lane.b32.xlu0 %v3297_v24, %s3014_s10  ;;  %v3303_v27 = vpack.c.bf16 %v429_v25, %v429_v25 }
 0x15b   : > { %597 = vrot.lane.b32.xlu1 %v3301_v26, %s3014_s10 }
 0x15c   : > { %501 = vrot.lane.b32.xlu0 %v3303_v27, %s3014_s10  ;;  %s3027_s10 = smov 24  }
 0x15f   : > { %702 = vrot.lane.b32.xlu1 %v3303_v27, %s3015_s11 }
 0x160   : > { %653 = vrot.lane.b32.xlu0 %v3297_v24, %s3015_s11 }
 0x163   : > { %798 = vrot.lane.b32.xlu1 %v3301_v26, %s3015_s11 }
 0x164   : > { %750 = vrot.lane.b32.xlu0 %v3295_v21, %s3015_s11 }
 0x167   : > { %898 = vrot.lane.b32.xlu1 %v3303_v27, %s3016_s7 }
 0x168   : > { %848 = vrot.lane.b32.xlu0 %v3297_v24, %s3016_s7 }
 0x16b   : > { %896 = vrot.lane.b32.xlu1 %v3303_v27, %s3017_s18 }
 0x16c   : > { %846 = vrot.lane.b32.xlu0 %v3297_v24, %s3017_s18 }
 0x16f   : > { %998 = vrot.lane.b32.xlu1 %v3301_v26, %s3016_s7 }
 0x170   : > { %948 = vrot.lane.b32.xlu0 %v3295_v21, %s3016_s7 }
 0x173   : > { %996 = vrot.lane.b32.xlu1 %v3301_v26, %s3017_s18 }
 0x174   : > { %946 = vrot.lane.b32.xlu0 %v3295_v21, %s3017_s18 }
 0x177   : > { %1102 = vrot.lane.b32.xlu1 %v3303_v27, %s3018_s13 }
 0x178   : > { %1054 = vrot.lane.b32.xlu0 %v3297_v24, %s3018_s13 }
 0x17b   : > { %1198 = vrot.lane.b32.xlu1 %v3301_v26, %s3018_s13 }
 0x17c   : > { %1150 = vrot.lane.b32.xlu0 %v3295_v21, %s3018_s13 }
 0x17f   : > { %1298 = vrot.lane.b32.xlu1 %v3303_v27, %s3019_s6 }
 0x180   : > { %1248 = vrot.lane.b32.xlu0 %v3297_v24, %s3019_s6 }
 0x183   : > { %1296 = vrot.lane.b32.xlu1 %v3303_v27, %s3020_s29 }
 0x184   : > { %1246 = vrot.lane.b32.xlu0 %v3297_v24, %s3020_s29 }
 0x187   : > { %1398 = vrot.lane.b32.xlu1 %v3301_v26, %s3019_s6 }
 0x188   : > { %1348 = vrot.lane.b32.xlu0 %v3295_v21, %s3019_s6 }
 0x18b   : > { %1396 = vrot.lane.b32.xlu1 %v3301_v26, %s3020_s29 }
 0x18c   : > { %1346 = vrot.lane.b32.xlu0 %v3295_v21, %s3020_s29 }
 0x18f   : > { %1502 = vrot.lane.b32.xlu1 %v3303_v27, %s3021_s9 }
 0x190   : > { %1454 = vrot.lane.b32.xlu0 %v3297_v24, %s3021_s9 }
 0x193   : > { %1598 = vrot.lane.b32.xlu1 %v3301_v26, %s3021_s9 }
 0x194   : > { %1550 = vrot.lane.b32.xlu0 %v3295_v21, %s3021_s9 }
 0x197   : > { %1698 = vrot.lane.b32.xlu1 %v3303_v27, %s3022_s12 }
 0x198   : > { %1648 = vrot.lane.b32.xlu0 %v3297_v24, %s3022_s12 }
 0x19b   : > { %1696 = vrot.lane.b32.xlu1 %v3303_v27, %s3023_s14 }
 0x19c   : > { %1646 = vrot.lane.b32.xlu0 %v3297_v24, %s3023_s14 }
 0x19f   : > { %1798 = vrot.lane.b32.xlu1 %v3301_v26, %s3022_s12 }
 0x1a0   : > { %1748 = vrot.lane.b32.xlu0 %v3295_v21, %s3022_s12 }
 0x1a3   : > { %1796 = vrot.lane.b32.xlu1 %v3301_v26, %s3023_s14 }
 0x1a4   : > { %1746 = vrot.lane.b32.xlu0 %v3295_v21, %s3023_s14 }
 0x1a7   : > { %1902 = vrot.lane.b32.xlu1 %v3303_v27, %s3024_s15 }
 0x1a8   : > { %1854 = vrot.lane.b32.xlu0 %v3297_v24, %s3024_s15 }
 0x1ab   : > { %1998 = vrot.lane.b32.xlu1 %v3301_v26, %s3024_s15 }
 0x1ac   : > { %1950 = vrot.lane.b32.xlu0 %v3295_v21, %s3024_s15 }
 0x1c9   : > { %v550_v30 = vpop.permute.xlu1 %549 }
 0x1ca   : > { %v453_v28 = vpop.permute.xlu0 %452  ;;  %v555_v33 = vsel %vm454_vm3, %v550_v30, 0 }
 0x1cb   : > { %v459_v29 = vsel %vm454_vm3, %v453_v28, 0 }
 0x1cc   : > { %2534 = vmatpush3.bf16.xpose.msra.mxu1 %v459_v29 }
 0x1cd   : > { %2545 = vmatprep.subr.bf16.mxu1 %v3012_v14  ;;  %v598_v34 = vpop.permute.xlu1 %597 }
 0x1ce   : > { %v502_v31 = vpop.permute.xlu0 %501  ;;  %v603_v35 = vsel %vm454_vm3, %v598_v34, 0 }
 0x1cf   : > { %v507_v32 = vsel %vm454_vm3, %v502_v31, 0 }
 0x1d0   : > { %2540 = vmatpush3.bf16.xpose.msra.mxu0 %v507_v32 }
 0x1d1   : > { %2551 = vmatprep.subr.bf16.mxu0 %v3012_v14  ;;  %v703_v38 = vpop.permute.xlu1 %702 }
 0x1d2   : > { %v654_v36 = vpop.permute.xlu0 %653  ;;  %v708_v39 = vsel %vm658_vm4, %v703_v38, 0 }
 0x1d3   : > { %2536 = vmatmul.mubr.msk.bf16.vlgmr.msra.gmra.mrb[0].mxu1 %vm454_vm3, %v3297_v24  ;;  %v660_v37 = vsel %vm658_vm4, %v654_v36, 0 }
 0x1d4   : > { %2546 = vmatpush3.bf16.xpose.msra.mxu1 %v555_v33  ;;  %2547 = vmatprep.mubr.msk.bf16.mxu1 %vm3013_vm2, %v3012_v14 }
 0x1d5   : > { %2557 = vmatprep.subr.bf16.mxu1 %v3012_v14  ;;  %v799_v42 = vpop.permute.xlu1 %798 }
 0x1d6   : > { %v751_v40 = vpop.permute.xlu0 %750  ;;  %v804_v58 = vsel %vm658_vm4, %v799_v42, 0 }
 0x1d7   : > { %2542 = vmatmul.mubr.msk.bf16.vlgmr.msra.gmra.mrb[4].mxu0 %vm454_vm3, %v3303_v27  ;;  %v756_v50 = vsel %vm658_vm4, %v751_v40, 0 }
 0x1d8   : > { %2552 = vmatpush3.bf16.xpose.msra.mxu0 %v603_v35  ;;  %2553 = vmatprep.mubr.msk.bf16.mxu0 %vm3013_vm2, %v3012_v14 }
 0x1d9   : > { %2563 = vmatprep.subr.bf16.mxu0 %v3012_v14  ;;  %v899_v54 = vpop.permute.xlu1 %898 }
 0x1da   : > { %v849_v46 = vpop.permute.xlu0 %848  ;;  %v904_v15 = vsel %vm454_vm3, %v899_v54, 0 }
 0x1db   : > { %2548 = vmatmul.mubr.msk.bf16.vlgmr.msra.gmra.mrb[4].mxu1 %vm454_vm3, %v3295_v21  ;;  %v854_v5 = vsel %vm454_vm3, %v849_v46, 0 }
 0x1dc   : > { %2558 = vmatpush3.bf16.msra.mxu1 %v660_v37  ;;  %2559 = vmatprep.mubr.msk.bf16.mxu1 %vm3013_vm2, %v3012_v14 }
 0x1dd   : > { %2569 = vmatprep.subr.bf16.mxu1 %v3012_v14  ;;  %v897_v2 = vpop.permute.xlu1 %896 }
 0x1de   : > { %v847_v59 = vpop.permute.xlu0 %846 }
 0x1df   : > { %2554 = vmatmul.mubr.msk.bf16.vlgmr.msra.gmra.mrb[8].mxu0 %vm454_vm3, %v3301_v26 }
 0x1e0   : > { %2564 = vmatpush3.bf16.msra.mxu0 %v708_v39  ;;  %2565 = vmatprep.mubr.msk.bf16.mxu0 %vm3013_vm2, %v3012_v14 }
 0x1e1   : > { %2575 = vmatprep.subr.bf16.mxu0 %v3012_v14  ;;  %v999_v16 = vpop.permute.xlu1 %998 }
 0x1e2   : > { %v949_v7 = vpop.permute.xlu0 %948  ;;  %v1004_v20 = vsel %vm454_vm3, %v999_v16, 0 }
 0x1e3   : > { %v954_v18 = vsel %vm454_vm3, %v949_v7, 0 }
 0x1e5   : > { %v997_v19 = vpop.permute.xlu1 %996 }
 0x1e6   : > { %v947_v17 = vpop.permute.xlu0 %946 }
 0x1e9   : > { %v1103_v23 = vpop.permute.xlu1 %1102 }
 0x1ea   : > { %v1055_v21 = vpop.permute.xlu0 %1054  ;;  %v1108_v24 = vsel %vm658_vm4, %v1103_v23, 0 }
 0x1eb   : > { %v1060_v22 = vsel %vm658_vm4, %v1055_v21, 0 }
 0x1ee   : > { %v1151_v39 = vpop.permute.xlu0 %1150 }
 0x2a6   : > { %v495_v41 = vpop.f32.mrb[0].mxu1 }
 0x2a7   : > { %v645_v43 = vmul.f32 0.17677669, %v495_v41  ;;  %v2537_v44 = vpop.f32.mrb[1].mxu1 }
 0x2a8   : > { %v498_v45 = vpop.f32.mrb[2].mxu1 }
 0x2a9   : > { %v649_v47 = vpack.c.bf16 %v645_v43, %v645_v43  ;;  %v2538_v48 = vpop.f32.mrb[3].mxu1  ;;  %v1199_v43 = vpop.permute.xlu1 %1198 }
 0x2aa   : > { %v543_v49 = vpop.f32.mrb[4].mxu0 }
 0x2ab   : > { %v646_v51 = vmul.f32 0.17677669, %v543_v49  ;;  %v2543_v52 = vpop.f32.mrb[5].mxu0  ;;  %2560 = vmatmul.mubr.msk.bf16.vlgmr.msra.gmra.mrb[8].mxu1 %vm454_vm3, %v649_v47  ;;  %v1249_v47 = vpop.permute.xlu0 %1248 }
 0x2ac   : > { %2570 = vmatpush3.bf16.msra.mxu1 %v756_v50  ;;  %v546_v53 = vpop.f32.mrb[6].mxu0  ;;  %2571 = vmatprep.mubr.msk.bf16.mxu1 %vm3013_vm2, %v3012_v14 }
 0x2ad   : > { %v650_v55 = vpack.c.bf16 %v646_v51, %v646_v51  ;;  %v2544_v56 = vpop.f32.mrb[7].mxu0  ;;  %2581 = vmatprep.subr.bf16.mxu1 %v3012_v14  ;;  %v1156_v51 = vsel %vm658_vm4, %v1151_v39, 0 }
 0x2ae   : > { %v591_v57 = vpop.f32.mrb[4].mxu1 }
 0x2af   : > { %v647_v60 = vmul.f32 0.17677669, %v591_v57  ;;  %v2549_v61 = vpop.f32.mrb[5].mxu1  ;;  %2566 = vmatmul.mubr.msk.bf16.vlgmr.msra.gmra.mrb[12].mxu0 %vm454_vm3, %v650_v55  ;;  %v1299_v55 = vpop.permute.xlu1 %1298 }
 0x2b0   : > { %2576 = vmatpush3.bf16.msra.mxu0 %v804_v58  ;;  %v594_v62 = vpop.f32.mrb[6].mxu1  ;;  %2577 = vmatprep.mubr.msk.bf16.mxu0 %vm3013_vm2, %v3012_v14  ;;  %v1304_v16 = vsel %vm454_vm3, %v1299_v55, 0 }
 0x2b1   : > { %v651_v63 = vpack.c.bf16 %v647_v60, %v647_v60  ;;  %v2550_v0 = vpop.f32.mrb[7].mxu1  ;;  %2587 = vmatprep.subr.bf16.mxu0 %v3012_v14  ;;  %v1247_v60 = vpop.permute.xlu0 %1246 }
 0x2b2   : > { %v639_v1 = vpop.f32.mrb[8].mxu0 }
 0x2b3   : > { %v648_v3 = vmul.f32 0.17677669, %v639_v1  ;;  %v2555_v4 = vpop.f32.mrb[9].mxu0  ;;  %2572 = vmatmul.mubr.msk.bf16.vlgmr.msra.gmra.mrb[12].mxu1 %vm454_vm3, %v651_v63 }
 0x2b4   : > { %v642_v6 = vpop.f32.mrb[10].mxu0  ;;  %2583 = vmatprep.mubr.msk.bf16.mxu1 %vm3013_vm2, %v3012_v14 }
 0x2b5   : > { %v652_v11 = vpack.c.bf16 %v648_v3, %v648_v3  ;;  %2582 = vmatpush3.bf16.xpose.msra.mxu1 %v854_v5  ;;  %v2556_v13 = vpop.f32.mrb[11].mxu0  ;;  %v1297_v3 = vpop.permute.xlu1 %1296  ;;  %v1254_v6 = vsel %vm454_vm3, %v1249_v47, 0 }
 0x2b6   : > { %2593 = vmatprep.subr.bf16.mxu1 %v3012_v14 }
 0x2b7   : > { %2578 = vmatmul.mubr.msk.bf16.vlgmr.msra.gmra.mrb[16].mxu0 %vm454_vm3, %v652_v11  ;;  %v1349_v11 = vpop.permute.xlu0 %1348 }
 0x2b8   : > { %2589 = vmatprep.mubr.msk.bf16.mxu0 %vm3013_vm2, %v3012_v14 }
 0x2b9   : > { %2588 = vmatpush3.bf16.xpose.msra.mxu0 %v904_v15 }
 0x2ba   : > { %2599 = vmatprep.subr.bf16.mxu0 %v3012_v14 }
 0x2bc   : > { %2584 = vmatmul.mubr.msk.bf16.vlgmr.msra.gmra.mrb[16].mxu1 %vm454_vm3, %v847_v59  ;;  %v1204_v59 = vsel %vm658_vm4, %v1199_v43, 0 }
 0x2bd   : > { %2594 = vmatpush3.bf16.xpose.msra.mxu1 %v954_v18  ;;  %2595 = vmatprep.mubr.msk.bf16.mxu1 %vm3013_vm2, %v3012_v14  ;;  %v1347_v18 = vpop.permute.xlu0 %1346 }
 0x2be   : > { %2605 = vmatprep.subr.bf16.mxu1 %v3012_v14 }
 0x2c0   : > { %2590 = vmatmul.mubr.msk.bf16.vlgmr.msra.gmra.mrb[20].mxu0 %vm454_vm3, %v897_v2 }
 0x2c1   : > { %2600 = vmatpush3.bf16.xpose.msra.mxu0 %v1004_v20  ;;  %2601 = vmatprep.mubr.msk.bf16.mxu0 %vm3013_vm2, %v3012_v14 }
 0x2c2   : > { %2611 = vmatprep.subr.bf16.mxu0 %v3012_v14 }
 0x2c4   : > { %2596 = vmatmul.mubr.msk.bf16.vlgmr.msra.gmra.mrb[20].mxu1 %vm454_vm3, %v947_v17  ;;  %v1399_v17 = vpop.permute.xlu1 %1398 }
 0x2c5   : > { %2606 = vmatpush3.bf16.msra.mxu1 %v1060_v22  ;;  %2607 = vmatprep.mubr.msk.bf16.mxu1 %vm3013_vm2, %v3012_v14  ;;  %v1404_v21 = vsel %vm454_vm3, %v1399_v17, 0  ;;  %v1455_v22 = vpop.permute.xlu0 %1454 }
 0x2c6   : > { %2617 = vmatprep.subr.bf16.mxu1 %v3012_v14  ;;  %v1460_v23 = vsel %vm658_vm4, %v1455_v22, 0 }
 0x2c8   : > { %2602 = vmatmul.mubr.msk.bf16.vlgmr.msra.gmra.mrb[24].mxu0 %vm454_vm3, %v997_v19  ;;  %v1354_v19 = vsel %vm454_vm3, %v1349_v11, 0  ;;  %v1397_v20 = vpop.permute.xlu1 %1396 }
 0x2c9   : > { %2612 = vmatpush3.bf16.msra.mxu0 %v1108_v24  ;;  %2613 = vmatprep.mubr.msk.bf16.mxu0 %vm3013_vm2, %v3012_v14 }
 0x2ca   : > { %2623 = vmatprep.subr.bf16.mxu0 %v3012_v14 }
 0x2cc   : > { %v1503_v24 = vpop.permute.xlu1 %1502 }
 0x37e   : > { %v3415_v25 = vpop.f32.mrb[8].mxu1 }
 0x37f   : > { %v2561_v26 = vpop.f32.mrb[9].mxu1 }
 0x380   : > { %v699_v27 = vpop.f32.mrb[10].mxu1  ;;  %v1508_v26 = vsel %vm658_vm4, %v1503_v24, 0 }
 0x381   : > { %v2562_v28 = vpop.f32.mrb[11].mxu1 }
 0x382   : > { %v3417_v29 = vpop.f32.mrb[12].mxu0 }
 0x383   : > { %v2567_v30 = vpop.f32.mrb[13].mxu0 }
 0x384   : > { %v747_v31 = vpop.f32.mrb[14].mxu0 }
 0x385   : > { %v2568_v32 = vpop.f32.mrb[15].mxu0 }
 0x386   : > { %v3419_v33 = vpop.f32.mrb[12].mxu1 }
 0x387   : > { %v2573_v34 = vpop.f32.mrb[13].mxu1 }
 0x388   : > { %v795_v35 = vpop.f32.mrb[14].mxu1 }
 0x389   : > { %v2574_v36 = vpop.f32.mrb[15].mxu1 }
 0x38a   : > { %v3421_v37 = vpop.f32.mrb[16].mxu0 }
 0x38b   : > { %v2579_v38 = vpop.f32.mrb[17].mxu0 }
 0x38c   : > { %v843_v40 = vpop.f32.mrb[18].mxu0 }
 0x38d   : > { %v2580_v41 = vpop.f32.mrb[19].mxu0 }
 0x38f   : > { %v890_v42 = vpop.f32.mrb[16].mxu1 }
 0x390   : > { %v1046_v44 = vmul.f32 0.17677669, %v890_v42  ;;  %v2585_v45 = vpop.f32.mrb[17].mxu1 }
 0x391   : > { %v893_v46 = vpop.f32.mrb[18].mxu1 }
 0x392   : > { %v1050_v48 = vpack.c.bf16 %v1046_v44, %v1046_v44  ;;  %v2586_v49 = vpop.f32.mrb[19].mxu1  ;;  %v1551_v44 = vpop.permute.xlu0 %1550 }
 0x393   : > { %v940_v50 = vpop.f32.mrb[20].mxu0 }
 0x394   : > { %v1047_v52 = vmul.f32 0.17677669, %v940_v50  ;;  %v2591_v53 = vpop.f32.mrb[21].mxu0  ;;  %2608 = vmatmul.mubr.msk.bf16.vlgmr.msra.gmra.mrb[24].mxu1 %vm454_vm3, %v1050_v48  ;;  %v1599_v48 = vpop.permute.xlu1 %1598 }
 0x395   : > { %2618 = vmatpush3.bf16.msra.mxu1 %v1156_v51  ;;  %v943_v54 = vpop.f32.mrb[22].mxu0  ;;  %2619 = vmatprep.mubr.msk.bf16.mxu1 %vm3013_vm2, %v3012_v14 }
 0x396   : > { %v1051_v56 = vpack.c.bf16 %v1047_v52, %v1047_v52  ;;  %v2592_v57 = vpop.f32.mrb[23].mxu0  ;;  %2629 = vmatprep.subr.bf16.mxu1 %v3012_v14  ;;  %v1649_v52 = vpop.permute.xlu0 %1648 }
 0x397   : > { %v990_v58 = vpop.f32.mrb[20].mxu1 }
 0x398   : > { %v1048_v61 = vmul.f32 0.17677669, %v990_v58  ;;  %v2597_v62 = vpop.f32.mrb[21].mxu1  ;;  %2614 = vmatmul.mubr.msk.bf16.vlgmr.msra.gmra.mrb[28].mxu0 %vm454_vm3, %v1051_v56  ;;  %v1556_v56 = vsel %vm658_vm4, %v1551_v44, 0 }
 0x399   : > { %2624 = vmatpush3.bf16.msra.mxu0 %v1204_v59  ;;  %v993_v63 = vpop.f32.mrb[22].mxu1  ;;  %2625 = vmatprep.mubr.msk.bf16.mxu0 %vm3013_vm2, %v3012_v14 }
 0x39a   : > { %v1052_v0 = vpack.c.bf16 %v1048_v61, %v1048_v61  ;;  %v2598_v1 = vpop.f32.mrb[23].mxu1  ;;  %2635 = vmatprep.subr.bf16.mxu0 %v3012_v14 }
 0x39b   : > { %v1040_v2 = vpop.f32.mrb[24].mxu0  ;;  %v1647_v1 = vpop.permute.xlu0 %1646 }
 0x39c   : > { %v1049_v4 = vmul.f32 0.17677669, %v1040_v2  ;;  %v2603_v5 = vpop.f32.mrb[25].mxu0  ;;  %2620 = vmatmul.mubr.msk.bf16.vlgmr.msra.gmra.mrb[28].mxu1 %vm454_vm3, %v1052_v0  ;;  %v1604_v0 = vsel %vm658_vm4, %v1599_v48, 0 }
 0x39d   : > { %v1043_v7 = vpop.f32.mrb[26].mxu0  ;;  %2631 = vmatprep.mubr.msk.bf16.mxu1 %vm3013_vm2, %v3012_v14 }
 0x39e   : > { %v1053_v13 = vpack.c.bf16 %v1049_v4, %v1049_v4  ;;  %2630 = vmatpush3.bf16.xpose.msra.mxu1 %v1254_v6  ;;  %v2604_v15 = vpop.f32.mrb[27].mxu0 }
 0x39f   : > { %2641 = vmatprep.subr.bf16.mxu1 %v3012_v14 }
 0x3a0   : > { %2626 = vmatmul.mubr.msk.bf16.vlgmr.msra.gmra.mrb[32].mxu0 %vm454_vm3, %v1053_v13 }
 0x3a1   : > { %2637 = vmatprep.mubr.msk.bf16.mxu0 %vm3013_vm2, %v3012_v14 }
 0x3a2   : > { %2636 = vmatpush3.bf16.xpose.msra.mxu0 %v1304_v16  ;;  %v1654_v16 = vsel %vm454_vm3, %v1649_v52, 0 }
 0x3a3   : > { %2647 = vmatprep.subr.bf16.mxu0 %v3012_v14 }
 0x3a5   : > { %2632 = vmatmul.mubr.msk.bf16.vlgmr.msra.gmra.mrb[32].mxu1 %vm454_vm3, %v1247_v60  ;;  %v1699_v60 = vpop.permute.xlu1 %1698 }
 0x3a6   : > { %2642 = vmatpush3.bf16.xpose.msra.mxu1 %v1354_v19  ;;  %2643 = vmatprep.mubr.msk.bf16.mxu1 %vm3013_vm2, %v3012_v14 }
 0x3a7   : > { %2653 = vmatprep.subr.bf16.mxu1 %v3012_v14 }
 0x3a9   : > { %2638 = vmatmul.mubr.msk.bf16.vlgmr.msra.gmra.mrb[36].mxu0 %vm454_vm3, %v1297_v3  ;;  %v1697_v11 = vpop.permute.xlu1 %1696 }
 0x3aa   : > { %2648 = vmatpush3.bf16.xpose.msra.mxu0 %v1404_v21  ;;  %2649 = vmatprep.mubr.msk.bf16.mxu0 %vm3013_vm2, %v3012_v14  ;;  %v1704_v21 = vsel %vm454_vm3, %v1699_v60, 0 }
 0x3ab   : > { %2659 = vmatprep.subr.bf16.mxu0 %v3012_v14 }
 0x3ad   : > { %2644 = vmatmul.mubr.msk.bf16.vlgmr.msra.gmra.mrb[36].mxu1 %vm454_vm3, %v1347_v18  ;;  %v1749_v18 = vpop.permute.xlu0 %1748  ;;  %v1799_v22 = vpop.permute.xlu1 %1798 }
 0x3ae   : > { %2654 = vmatpush3.bf16.msra.mxu1 %v1460_v23  ;;  %2655 = vmatprep.mubr.msk.bf16.mxu1 %vm3013_vm2, %v3012_v14  ;;  %v1754_v24 = vsel %vm454_vm3, %v1749_v18, 0 }
 0x3af   : > { %2665 = vmatprep.subr.bf16.mxu1 %v3012_v14 }
 0x3b1   : > { %2650 = vmatmul.mubr.msk.bf16.vlgmr.msra.gmra.mrb[40].mxu0 %vm454_vm3, %v1397_v20  ;;  %v1747_v23 = vpop.permute.xlu0 %1746 }
 0x3b2   : > { %2660 = vmatpush3.bf16.msra.mxu0 %v1508_v26  ;;  %2661 = vmatprep.mubr.msk.bf16.mxu0 %vm3013_vm2, %v3012_v14  ;;  %v1797_v26 = vpop.permute.xlu1 %1796 }
 0x3b3   : > { %2671 = vmatprep.subr.bf16.mxu0 %v3012_v14 }
 0x467   : > { %v1096_v27 = vpop.f32.mrb[24].mxu1 }
 0x468   : > { %2050 = vrot.lane.b32.xlu0 %v1096_v27, %s3025_s8  ;;  %v2609_v28 = vpop.f32.mrb[25].mxu1  ;;  %v1804_v27 = vsel %vm454_vm3, %v1799_v22, 0  ;;  %v2832_v22 = vld [vmem:[%s297_s25 + $0x8] sm:$0xff]  }
 0x469   : > { %v1099_v30 = vpop.f32.mrb[26].mxu1  ;;  %v1855_v28 = vpop.permute.xlu0 %1854 }
 0x46a   : > { %v2610_v31 = vpop.f32.mrb[27].mxu1  ;;  %v1860_v30 = vsel %vm658_vm4, %v1855_v28, 0 }
 0x46b   : > { %v1144_v32 = vpop.f32.mrb[28].mxu0  ;;  %v1903_v31 = vpop.permute.xlu1 %1902 }
 0x46c   : > { %2052 = vrot.lane.b32.xlu1 %v1144_v32, %s3025_s8  ;;  %v2615_v34 = vpop.f32.mrb[29].mxu0  ;;  %v1908_v32 = vsel %vm658_vm4, %v1903_v31, 0 }
 0x46d   : > { %v1147_v35 = vpop.f32.mrb[30].mxu0 }
 0x46e   : > { %v2616_v36 = vpop.f32.mrb[31].mxu0 }
 0x46f   : > { %v1192_v38 = vpop.f32.mrb[28].mxu1 }
 0x470   : > { %2054 = vrot.lane.b32.xlu0 %v1192_v38, %s3025_s8  ;;  %v2621_v39 = vpop.f32.mrb[29].mxu1 }
 0x471   : > { %v1195_v40 = vpop.f32.mrb[30].mxu1 }
 0x472   : > { %v2622_v41 = vpop.f32.mrb[31].mxu1 }
 0x473   : > { %v1240_v42 = vpop.f32.mrb[32].mxu0 }
 0x474   : > { %2056 = vrot.lane.b32.xlu1 %v1240_v42, %s3025_s8  ;;  %v2627_v43 = vpop.f32.mrb[33].mxu0 }
 0x475   : > { %v1243_v45 = vpop.f32.mrb[34].mxu0 }
 0x476   : > { %v2628_v46 = vpop.f32.mrb[35].mxu0 }
 0x478   : > { %v1290_v47 = vpop.f32.mrb[32].mxu1 }
 0x479   : > { %v1446_v49 = vmul.f32 0.17677669, %v1290_v47  ;;  %v2633_v50 = vpop.f32.mrb[33].mxu1 }
 0x47a   : > { %v1293_v51 = vpop.f32.mrb[34].mxu1 }
 0x47b   : > { %v1450_v53 = vpack.c.bf16 %v1446_v49, %v1446_v49  ;;  %v2634_v54 = vpop.f32.mrb[35].mxu1 }
 0x47c   : > { %v1340_v55 = vpop.f32.mrb[36].mxu0  ;;  %v1951_v54 = vpop.permute.xlu0 %1950 }
 0x47d   : > { %v1447_v57 = vmul.f32 0.17677669, %v1340_v55  ;;  %v2639_v58 = vpop.f32.mrb[37].mxu0  ;;  %2656 = vmatmul.mubr.msk.bf16.vlgmr.msra.gmra.mrb[40].mxu1 %vm454_vm3, %v1450_v53 }
 0x47e   : > { %2666 = vmatpush3.bf16.msra.mxu1 %v1556_v56  ;;  %v1343_v59 = vpop.f32.mrb[38].mxu0  ;;  %2667 = vmatprep.mubr.msk.bf16.mxu1 %vm3013_vm2, %v3012_v14 }
 0x47f   : > { %v1451_v61 = vpack.c.bf16 %v1447_v57, %v1447_v57  ;;  %v2640_v62 = vpop.f32.mrb[39].mxu0  ;;  %2677 = vmatprep.subr.bf16.mxu1 %v3012_v14  ;;  %v1956_v59 = vsel %vm658_vm4, %v1951_v54, 0 }
 0x480   : > { %v1390_v63 = vpop.f32.mrb[36].mxu1  ;;  %v1999_v62 = vpop.permute.xlu1 %1998 }
 0x481   : > { %v1448_v2 = vmul.f32 0.17677669, %v1390_v63  ;;  %v2645_v3 = vpop.f32.mrb[37].mxu1  ;;  %2662 = vmatmul.mubr.msk.bf16.vlgmr.msra.gmra.mrb[44].mxu0 %vm454_vm3, %v1451_v61 }
 0x482   : > { %2672 = vmatpush3.bf16.msra.mxu0 %v1604_v0  ;;  %v1393_v4 = vpop.f32.mrb[38].mxu1  ;;  %2673 = vmatprep.mubr.msk.bf16.mxu0 %vm3013_vm2, %v3012_v14  ;;  %v2004_v3 = vsel %vm658_vm4, %v1999_v62, 0 }
 0x483   : > { %v1452_v5 = vpack.c.bf16 %v1448_v2, %v1448_v2  ;;  %v2646_v6 = vpop.f32.mrb[39].mxu1  ;;  %2683 = vmatprep.subr.bf16.mxu0 %v3012_v14 }
 0x484   : > { %v1440_v7 = vpop.f32.mrb[40].mxu0 }
 0x485   : > { %v1449_v13 = vmul.f32 0.17677669, %v1440_v7  ;;  %v2651_v15 = vpop.f32.mrb[41].mxu0  ;;  %2668 = vmatmul.mubr.msk.bf16.vlgmr.msra.gmra.mrb[44].mxu1 %vm454_vm3, %v1452_v5 }
 0x486   : > { %v1443_v17 = vpop.f32.mrb[42].mxu0  ;;  %2679 = vmatprep.mubr.msk.bf16.mxu1 %vm3013_vm2, %v3012_v14 }
 0x487   : > { %v1453_v19 = vpack.c.bf16 %v1449_v13, %v1449_v13  ;;  %2678 = vmatpush3.bf16.xpose.msra.mxu1 %v1654_v16  ;;  %v2652_v20 = vpop.f32.mrb[43].mxu0 }
 0x488   : > { %2689 = vmatprep.subr.bf16.mxu1 %v3012_v14  ;;  %v2831_v20 = vld [vmem:[%s297_s25] sm:$0xff]  }
 0x489   : > { %2674 = vmatmul.mubr.msk.bf16.vlgmr.msra.gmra.mrb[48].mxu0 %vm454_vm3, %v1453_v19 }
 0x48a   : > { %2685 = vmatprep.mubr.msk.bf16.mxu0 %vm3013_vm2, %v3012_v14 }
 0x48b   : > { %2684 = vmatpush3.bf16.xpose.msra.mxu0 %v1704_v21 }
 0x48c   : > { %2695 = vmatprep.subr.bf16.mxu0 %v3012_v14 }
 0x48e   : > { %2680 = vmatmul.mubr.msk.bf16.vlgmr.msra.gmra.mrb[48].mxu1 %vm454_vm3, %v1647_v1 }
 0x48f   : > { %2690 = vmatpush3.bf16.xpose.msra.mxu1 %v1754_v24  ;;  %2691 = vmatprep.mubr.msk.bf16.mxu1 %vm3013_vm2, %v3012_v14 }
 0x490   : > { %2701 = vmatprep.subr.bf16.mxu1 %v3012_v14 }
 0x492   : > { %2686 = vmatmul.mubr.msk.bf16.vlgmr.msra.gmra.mrb[52].mxu0 %vm454_vm3, %v1697_v11 }
 0x493   : > { %2696 = vmatpush3.bf16.xpose.msra.mxu0 %v1804_v27  ;;  %2697 = vmatprep.mubr.msk.bf16.mxu0 %vm3013_vm2, %v3012_v14 }
 0x494   : > { %2707 = vmatprep.subr.bf16.mxu0 %v3012_v14 }
 0x496   : > { %2692 = vmatmul.mubr.msk.bf16.vlgmr.msra.gmra.mrb[52].mxu1 %vm454_vm3, %v1747_v23 }
 0x497   : > { %2702 = vmatpush3.bf16.msra.mxu1 %v1860_v30  ;;  %2703 = vmatprep.mubr.msk.bf16.mxu1 %vm3013_vm2, %v3012_v14 }
 0x498   : > { %2713 = vmatprep.subr.bf16.mxu1 %v3012_v14 }
 0x49a   : > { %2698 = vmatmul.mubr.msk.bf16.vlgmr.msra.gmra.mrb[56].mxu0 %vm454_vm3, %v1797_v26 }
 0x49b   : > { %2708 = vmatpush3.bf16.msra.mxu0 %v1908_v32  ;;  %2709 = vmatprep.mubr.msk.bf16.mxu0 %vm3013_vm2, %v3012_v14 }
 0x49c   : > { %2719 = vmatprep.subr.bf16.mxu0 %v3012_v14 }
 0x550   : > { %v1496_v34 = vpop.f32.mrb[40].mxu1 }
 0x551   : > { %2066 = vrot.lane.b32.xlu0 %v1496_v34, %s3026_s27  ;;  %v2657_v35 = vpop.f32.mrb[41].mxu1 }
 0x552   : > { %v1499_v36 = vpop.f32.mrb[42].mxu1 }
 0x553   : > { %v2658_v38 = vpop.f32.mrb[43].mxu1 }
 0x554   : > { %v1544_v39 = vpop.f32.mrb[44].mxu0 }
 0x555   : > { %2068 = vrot.lane.b32.xlu1 %v1544_v39, %s3026_s27  ;;  %v2663_v40 = vpop.f32.mrb[45].mxu0 }
 0x556   : > { %v1547_v41 = vpop.f32.mrb[46].mxu0 }
 0x557   : > { %v2664_v42 = vpop.f32.mrb[47].mxu0  ;;  %v2051_v41 = vpop.permute.xlu0 %2050 }
 0x558   : > { %v1592_v43 = vpop.f32.mrb[44].mxu1  ;;  %v2053_v42 = vpop.permute.xlu1 %2052 }
 0x559   : > { %2070 = vrot.lane.b32.xlu0 %v1592_v43, %s3026_s27  ;;  %v2669_v44 = vpop.f32.mrb[45].mxu1 }
 0x55a   : > { %v1595_v45 = vpop.f32.mrb[46].mxu1 }
 0x55b   : > { %v2670_v46 = vpop.f32.mrb[47].mxu1  ;;  %v2055_v43 = vpop.permute.xlu0 %2054 }
 0x55c   : > { %v1640_v47 = vpop.f32.mrb[48].mxu0  ;;  %v2057_v44 = vpop.permute.xlu1 %2056 }
 0x55d   : > { %2072 = vrot.lane.b32.xlu1 %v1640_v47, %s3026_s27  ;;  %v2675_v48 = vpop.f32.mrb[49].mxu0 }
 0x55e   : > { %v1643_v49 = vpop.f32.mrb[50].mxu0 }
 0x55f   : > { %v2676_v50 = vpop.f32.mrb[51].mxu0 }
 0x560   : > { %v2094_v50 = vsel %vm454_vm3, %v3415_v25, %v2051_v41  ;;  %v2096_v25 = vsel %vm454_vm3, %v3419_v33, %v2055_v43  ;;  %v2428_v33 = vld [vmem:[%s336_s16] ss:$0 sm:$0xff] }
 0x561   : > { %v1690_v51 = vpop.f32.mrb[48].mxu1 }
 0x562   : > { %v1846_v52 = vmul.f32 0.17677669, %v1690_v51  ;;  %v2681_v53 = vpop.f32.mrb[49].mxu1 }
 0x563   : > { %v1693_v55 = vpop.f32.mrb[50].mxu1 }
 0x564   : > { %v1850_v56 = vpack.c.bf16 %v1846_v52, %v1846_v52  ;;  %v2682_v57 = vpop.f32.mrb[51].mxu1  ;;  %v2095_v52 = vsel %vm454_vm3, %v3417_v29, %v2053_v42  ;;  %v2097_v29 = vsel %vm454_vm3, %v3421_v37, %v2057_v44 }
 0x565   : > { %v1740_v58 = vpop.f32.mrb[52].mxu0 }
 0x566   : > { %v1847_v60 = vmul.f32 0.17677669, %v1740_v58  ;;  %v2687_v61 = vpop.f32.mrb[53].mxu0  ;;  %2704 = vmatmul.mubr.msk.bf16.vlgmr.msra.gmra.mrb[56].mxu1 %vm454_vm3, %v1850_v56 }
 0x567   : > { %2714 = vmatpush3.bf16.msra.mxu1 %v1956_v59  ;;  %v1743_v63 = vpop.f32.mrb[54].mxu0  ;;  %2715 = vmatprep.mubr.msk.bf16.mxu1 %vm3013_vm2, %v3012_v14 }
 0x568   : > { %v1851_v0 = vpack.c.bf16 %v1847_v60, %v1847_v60  ;;  %v2688_v1 = vpop.f32.mrb[55].mxu0  ;;  %2725 = vmatprep.subr.bf16.mxu1 %v2831_v20 }
 0x569   : > { %v1790_v2 = vpop.f32.mrb[52].mxu1 }
 0x56a   : > { %v1848_v4 = vmul.f32 0.17677669, %v1790_v2  ;;  %v2693_v5 = vpop.f32.mrb[53].mxu1  ;;  %2710 = vmatmul.mubr.msk.bf16.vlgmr.msra.gmra.mrb[60].mxu0 %vm454_vm3, %v1851_v0 }
 0x56b   : > { %2720 = vmatpush3.bf16.msra.mxu0 %v2004_v3  ;;  %v1793_v6 = vpop.f32.mrb[54].mxu1  ;;  %2721 = vmatprep.mubr.msk.bf16.mxu0 %vm3013_vm2, %v3012_v14 }
 0x56c   : > { %v1852_v7 = vpack.c.bf16 %v1848_v4, %v1848_v4  ;;  %v2694_v11 = vpop.f32.mrb[55].mxu1 }
 0x56d   : > { %v1840_v13 = vpop.f32.mrb[56].mxu0 }
 0x56e   : > { %v1849_v15 = vmul.f32 0.17677669, %v1840_v13  ;;  %v2699_v16 = vpop.f32.mrb[57].mxu0  ;;  %2716 = vmatmul.mubr.msk.bf16.vlgmr.msra.gmra.mrb[60].mxu1 %vm454_vm3, %v1852_v7 }
 0x56f   : > { %v1843_v17 = vpop.f32.mrb[58].mxu0  ;;  %2726 = vmatpush3.bf16.msra.mxu1 %v2831_v20 }
 0x570   : > { %v1853_v18 = vpack.c.bf16 %v1849_v15, %v1849_v15  ;;  %v2700_v19 = vpop.f32.mrb[59].mxu0  ;;  %2727 = vmatprep.subr.bf16.mxu1 %v2832_v22 }
 0x572   : > { %2722 = vmatmul.mubr.msk.bf16.vlgmr.msra.gmra.mrb[64].mxu0 %vm454_vm3, %v1853_v18 }
 0x573   : > { %2728 = vmatpush3.bf16.msra.mxu1 %v2832_v22 }
 0x5c3   : > { %v2067_v45 = vpop.permute.xlu0 %2066 }
 0x5c4   : > { %v2099_v51 = vsel %vm2098_vm5, %v2094_v50, %v2067_v45 }
 0x5c7   : > { %v2069_v46 = vpop.permute.xlu1 %2068 }
 0x5c8   : > { %v2100_v54 = vsel %vm2098_vm5, %v2095_v52, %v2069_v46 }
 0x5cb   : > { %v2071_v47 = vpop.permute.xlu0 %2070 }
 0x5cc   : > { %v2101_v61 = vsel %vm2098_vm5, %v2096_v25, %v2071_v47 }
 0x5cf   : > { %v2073_v48 = vpop.permute.xlu1 %2072 }
 0x5d0   : > { %v2102_v63 = vsel %vm2098_vm5, %v2097_v29, %v2073_v48 }
 0x639   : > { %v1896_v21 = vpop.f32.mrb[56].mxu1 }
 0x63a   : > { %2082 = vrot.lane.b32.xlu0 %v1896_v21, %s3027_s10  ;;  %v2705_v14 = vpop.f32.mrb[57].mxu1 }
 0x63b   : > { %v1899_v23 = vpop.f32.mrb[58].mxu1 }
 0x63c   : > { %v2706_v24 = vpop.f32.mrb[59].mxu1 }
 0x63d   : > { %v1944_v26 = vpop.f32.mrb[60].mxu0 }
 0x63e   : > { %2084 = vrot.lane.b32.xlu1 %v1944_v26, %s3027_s10  ;;  %v2711_v27 = vpop.f32.mrb[61].mxu0 }
 0x63f   : > { %v1947_v28 = vpop.f32.mrb[62].mxu0 }
 0x640   : > { %v2712_v30 = vpop.f32.mrb[63].mxu0 }
 0x641   : > { %v1992_v31 = vpop.f32.mrb[60].mxu1 }
 0x642   : > { %2086 = vrot.lane.b32.xlu0 %v1992_v31, %s3027_s10  ;;  %v2717_v32 = vpop.f32.mrb[61].mxu1 }
 0x643   : > { %v1995_v34 = vpop.f32.mrb[62].mxu1 }
 0x644   : > { %v2718_v35 = vpop.f32.mrb[63].mxu1 }
 0x645   : > { %v2040_v36 = vpop.f32.mrb[64].mxu0 }
 0x646   : > { %2088 = vrot.lane.b32.xlu1 %v2040_v36, %s3027_s10  ;;  %v2723_v38 = vpop.f32.mrb[65].mxu0 }
 0x647   : > { %v2043_v39 = vpop.f32.mrb[66].mxu0 }
 0x648   : > { %v2724_v40 = vpop.f32.mrb[67].mxu0 }
 0x6ac   : > { %v2083_v49 = vpop.permute.xlu0 %2082 }
 0x6ad   : > { %v2104_v53 = vsel %vm2103_vm6, %v2099_v51, %v2083_v49 }
 0x6ae   : > { %v2108_v57 = vadd.f32 %v2104_v53, %v3270_v8 }
 0x6b0   : > { %v2085_v55 = vpop.permute.xlu1 %2084 }
 0x6b1   : > { %v2105_v56 = vsel %vm2103_vm6, %v2100_v54, %v2085_v55 }
 0x6b2   : > { %v2109_v58 = vadd.f32 %v2105_v56, %v3272_v9 }
 0x6b4   : > { %v2112_v59 = vpack.c.bf16 %v2109_v58, %v2108_v57  ;;  %v2087_v60 = vpop.permute.xlu0 %2086 }
 0x6b5   : > { %v2106_v62 = vsel %vm2103_vm6, %v2101_v61, %v2087_v60 }
 0x6b6   : > { %2729 = vmatprep.mubr.msk.bf16.mxu1 %vm384_vm1, %v2112_v59  ;;  %v2110_v9 = vadd.f32 %v2106_v62, %v3274_v10 }
 0x6b8   : > { %v2089_v8 = vpop.permute.xlu1 %2088 }
 0x6b9   : > { %v2107_v0 = vsel %vm2103_vm6, %v2102_v63, %v2089_v8 }
 0x6ba   : > { %v2111_v1 = vadd.f32 %v2107_v0, %v3278_v12 }
 0x6bc   : > { %v2113_v2 = vpack.c.bf16 %v2111_v1, %v2110_v9 }
 0x6be   : > { %2730 = vmatmul.mubr.msk.bf16.vlgmr.msra.gmra.mrb[64].mxu1 %vm384_vm1, %v2113_v2 }
 0x791   : > { %v2731_v37 = vpop.f32.mrb[64].mxu1 }
 0x792   : > { %v2186_v3 = vadd.f32 %v2731_v37, %v2428_v33  ;;  %v2177_v4 = vpop.f32.mrb[65].mxu1 }
 0x793   : > { %v2178_v5 = vadd.f32 %v2428_v33, %v2177_v4  ;;  %v2732_v6 = vpop.f32.mrb[66].mxu1  ;;  %2203 = sbr.rel (%p2433_p1) target bundleno = 1964 (0x7ac), region = 60 }
 0x794   : > { %v2194_v7 = vadd.f32 %v2186_v3, %v2110_v9  ;;  %v2189_v11 = vadd.f32 %v2732_v6, %v2428_v33  ;;  %v2180_v13 = vpop.f32.mrb[67].mxu1 }
 0x795   : > { %v2192_v15 = vadd.f32 %v2178_v5, %v2108_v57  ;;  %v2181_v10 = vadd.f32 %v2428_v33, %v2180_v13 }
 0x796   : > { %2198 = vst.msk [vmem:[#allocation2 + $0x10] sm:$0xff] %vm384_vm1, %v2194_v7  ;;  %v2195_v12 = vadd.f32 %v2189_v11, %v2111_v1  ;;  %v2218_v19 = vsel (!%p2433_p1), %vm384_vm1, %v2194_v7, 0.0 }
 0x797   : > { %2196 = vst.msk [vmem:[#allocation2] sm:$0xff] %vm384_vm1, %v2192_v15  ;;  %v2193_v16 = vadd.f32 %v2181_v10, %v2109_v58  ;;  %v2204_v17 = vsel (!%p2433_p1), %vm384_vm1, %v2192_v15, 0.0  ;;  %v2219_v14 = vrot.slane (!%p2433_p1), %v2218_v19, 4 }
 0x798   : > { %2199 = vst.msk [vmem:[#allocation2 + $0x18] sm:$0xff] %vm384_vm1, %v2195_v12  ;;  %v2225_v20 = vsel (!%p2433_p1), %vm384_vm1, %v2195_v12, 0.0  ;;  %v2205_v21 = vrot.slane (!%p2433_p1), %v2204_v17, 4 }
 0x799   : > { %2197 = vst.msk [vmem:[#allocation2 + $0x8] sm:$0xff] %vm384_vm1, %v2193_v16  ;;  %v2211_v18 = vsel (!%p2433_p1), %vm384_vm1, %v2193_v16, 0.0  ;;  %v2226_v23 = vrot.slane (!%p2433_p1), %v2225_v20, 4  ;;  %v2220_v27 = vadd.f32 (!%p2433_p1), %v2219_v14, %v2218_v19 }
 0x79a   : > { %v2212_v22 = vrot.slane %v2211_v18, 4  ;;  %v2206_v24 = vadd.f32 %v2205_v21, %v2204_v17 }
 0x79b   : > { %v2227_v28 = vadd.f32 %v2226_v23, %v2225_v20  ;;  %v2221_v32 = vrot.slane %v2220_v27, 2 }
 0x79c   : > { %v2213_v26 = vadd.f32 %v2212_v22, %v2211_v18  ;;  %v2207_v30 = vrot.slane %v2206_v24, 2 }
 0x79d   : > { %v2228_v34 = vrot.slane %v2227_v28, 2  ;;  %v2222_v38 = vadd.f32 %v2221_v32, %v2220_v27 }
 0x79e   : > { %v2214_v31 = vrot.slane %v2213_v26, 2  ;;  %v2208_v35 = vadd.f32 %v2207_v30, %v2206_v24 }
 0x79f   : > { %v2229_v39 = vadd.f32 %v2228_v34, %v2227_v28  ;;  %v2223_v42 = vrot.slane %v2222_v38, 1 }
 0x7a0   : > { %v2215_v36 = vadd.f32 %v2214_v31, %v2213_v26  ;;  %v2209_v40 = vrot.slane %v2208_v35, 1 }
 0x7a1   : > { %v2230_v43 = vrot.slane %v2229_v39, 1  ;;  %v2224_v46 = vadd.f32 %v2223_v42, %v2222_v38 }
 0x7a2   : > { %v2216_v41 = vrot.slane %v2215_v36, 1  ;;  %v2210_v44 = vadd.f32 %v2209_v40, %v2208_v35 }
 0x7a3   : > { %v2231_v47 = vadd.f32 %v2230_v43, %v2229_v39  ;;  %v2235_v50 = vmul.f32 0.125, %v2224_v46 }
 0x7a4   : > { %v2217_v45 = vadd.f32 %v2216_v41, %v2215_v36  ;;  %v2233_v48 = vmul.f32 0.125, %v2210_v44 }
 0x7a5   : > { %v2236_v51 = vmul.f32 0.125, %v2231_v47 }
 0x7a6   : > { %v2234_v49 = vmul.f32 0.125, %v2217_v45 }
 0x7a8   : > { %v2242_v52 = vsel %vm2241_vm7, %v2234_v49, %v2233_v48 }
 0x7a9   : > { %v2244_v53 = vsel %vm2243_vm8, %v2235_v50, %v2242_v52 }
 0x7aa   : > { %v2246_v54 = vsel %vm2245_vm9, %v2236_v51, %v2244_v53 }
 0x7ab   : > { %2249 = vst.msk [vmem:[#allocation9] sm:$0xf] %vm2248_vm10, %v2246_v54 }
 0x7ac PF: > { %p2759_p5 = scmp.eq.s32.totalorder %s3164_s26, 1  ;;  %s3028_s21 = smov [#allocation9]  }
 0x7ad   : > { %s2259_s17 = sshll.u32 %s3028_s21, 4  ;;  %s2260_s17 = int_to_ptr.vmem [resolvable:$true] %s2259_s17 }
 0x7ae   : > { %s2921_s16 = scalar_lea.vmem %s2260_s17, 64  ;;  %p2928_p10 = scmp.lt.s32.totalorder %s2260_s17, %s2260_s17 }
 0x7af   : > { %p2922_p7 = scmp.ne.s32.totalorder %s2260_s17, %s2921_s16  ;;  %p2929_p8 = scmp.lt.s32.totalorder %s2921_s16, %s2921_s16 }
 0x7b1   : > { %p2923_p11 = pnand %p2922_p7, %p2759_p5  ;;  %p2930_p13 = por %p2929_p8, %p2928_p10 }
 0x7b3   : > { %p2924_p12 = pneg %p2923_p11 }
 0x7b5   : > { %p2931_p2 = pnand %p2930_p13, %p2924_p12 }
 0x7b7   : > { %2934 = shalt.err (!%p2931_p2)
}
 0x7b8   : > { %s2935_s18 = scalar_lea.hbm %s3599_s5, 64 }
 0x7b9   : > { %p2936_p4 = scmp.ne.s32.totalorder %s3599_s5, %s2935_s18  ;;  %p2941_p9 = scmp.lt.u32.totalorder %s2935_s18, %s3599_s5 }
 0x7bb   : > { %p2937_p6 = pnand %p2936_p4, %p2759_p5 }
 0x7bd   : > { %p2938_p3 = pneg %p2937_p6 }
 0x7bf   : > { %p2943_p0 = pnand %p2941_p9, %p2938_p3 }
 0x7c1   : > { %2946 = shalt.err (!%p2943_p0)
}
 0x7c2   : > { %2742 = dma.vmem_to_hbm [thread:$0]  (%p2759_p5), %s2260_s17, 64, %s3599_s5, [#allocation5]  }
 0x7c3   : > { %2980 = dma.done.wait (%p2759_p5), [#allocation5], 64  }
 0x7c4   : > { %2982 = vsyncadd (%p2759_p5), [#allocation5], 4294967232 }
 0x7c5 PF: > { %s20_s23 = sadd.s32 1, %s3005_s23   ;;  %s3614_s18 = smov %s2989_s19 }
 0x7c6   : > { %p17_p1 = scmp.ge.s32.totalorder %s20_s23, 4   ;;  %s3615_s19 = smov %s2993_s20 }
 0x7c7   : > { %s3616_s20 = smov %s3106_s30  ;;  %s3617_s21 = smov %s3001_s22 }
 0x7c8   : > { %s3618_s22 = smov %s3620_s24  ;;  %19 = sbr.rel (!%p17_p1) target bundleno = 6 (0x6), region = 109 }
 0x7cf   :  { %2272 = vsyncpa [#allocation4], 1 }
 0x7d0   :  { %2274 = vsyncpa [#allocation4 + $0x1], 1 }
 0x7d1   :  { %2275 = vsyncpa [#allocation7], 1 }
 0x7d2   :  { %2277 = vsyncpa [#allocation7 + $0x1], 1 }
 0x7d3   :  { %2278 = vsyncpa [#allocation5], 1 }
 0x7d4   :  { %2280 = vsyncpa [#allocation5 + $0x1], 1 }

</bundles_post_ra>
